<compile_context>
chip_gen: v6e
topology: v6e:2x2x1
jax: 0.10.0
libtpu: 0.0.40
codegen_flags: <defaults>
</compile_context>

<pallas_src>
import math

import jax
import jax.numpy as jnp
from jax.experimental import pallas as pl
from jax.experimental.pallas import tpu as pltpu

# ----------------------- small synthetic config -----------------------
IMG = 16                        # image height/width
PATCH = 8                       # patch size -> 2x2 = 4 patches
CIN = 3                         # RGB
WIDTH = 32                      # transformer width
HEADS = 4                       # attention heads
HEAD_DIM = WIDTH // HEADS       # 8
LAYERS = 2                      # transformer depth
OUT_DIM = 16                    # final CLIP embedding dim
EPS = 1e-5
GRID_P = IMG // PATCH           # 2
NPATCH = GRID_P * GRID_P        # 4
SEQ = 1 + NPATCH                # CLS + patches = 5
PATCH_DIM = CIN * PATCH * PATCH  # 192


def _layernorm(x, g, b):
    mu = jnp.mean(x, axis=-1, keepdims=True)
    var = jnp.mean(jnp.square(x - mu), axis=-1, keepdims=True)
    return (x - mu) * jax.lax.rsqrt(var + EPS) * g + b


# ------------------------ fused encoder kernel -------------------------
def encoder_kernel(
    # layer-invariant inputs (same block every grid step -> loaded once)
    patches_ref, conv_w_ref, cls_ref, pos_ref, ln_pre_g_ref, ln_pre_b_ref,
    # per-layer stacked params (leading LAYERS axis, sliced by BlockSpec)
    ln1_g_ref, ln1_b_ref, wqkv_ref, bqkv_ref, wo_ref, bo_ref,
    ln2_g_ref, ln2_b_ref, wfc_ref, bfc_ref, wpr_ref, bpr_ref,
    # head params
    ln_post_g_ref, ln_post_b_ref, proj_ref,
    # output
    out_ref,
    # VMEM-resident activations [B, SEQ, WIDTH], persists across grid steps
    x_scr,
):
    layer = pl.program_id(0)
    B = x_scr.shape[0]
    scale = 1.0 / math.sqrt(HEAD_DIM)

    # ---- phase 0: patch-embed (conv as matmul) + CLS + pos + ln_pre ----
    # Build the full [B, SEQ, WIDTH] tensor and write the scratch tile once
    # (no strided / masked partial stores).
    @pl.when(layer == 0)
    def _embed():
        pe = jnp.dot(patches_ref[...], conv_w_ref[...],
                     preferred_element_type=jnp.float32)          # [B*NP, D]
        pe = pe.reshape(B, NPATCH, WIDTH)
        cls_b = jnp.broadcast_to(cls_ref[...][None], (B, 1, WIDTH))
        x0 = jnp.concatenate([cls_b, pe], axis=1) + pos_ref[...][None]
        x_scr[...] = _layernorm(x0, ln_pre_g_ref[...], ln_pre_b_ref[...])

    # ---------------- every step: one pre-LN transformer block ----------
    x = x_scr[...].reshape(B * SEQ, WIDTH)                        # [N, D]

    # multi-head self-attention (pre-LN), heads batched
    xn = _layernorm(x, ln1_g_ref[0], ln1_b_ref[0])
    qkv = jnp.dot(xn, wqkv_ref[0],
                  preferred_element_type=jnp.float32) + bqkv_ref[0]

    def split_heads(t):
        # [B*SEQ, D] -> [B*HEADS, SEQ, HEAD_DIM]
        t = t.reshape(B, SEQ, HEADS, HEAD_DIM)
        t = jnp.swapaxes(t, 1, 2)
        return t.reshape(B * HEADS, SEQ, HEAD_DIM)

    q = split_heads(qkv[:, 0 * WIDTH:1 * WIDTH] * scale)   # scale folded in q
    k = split_heads(qkv[:, 1 * WIDTH:2 * WIDTH])
    v = split_heads(qkv[:, 2 * WIDTH:3 * WIDTH])

    s = jnp.einsum("bqd,bkd->bqk", q, k,
                   preferred_element_type=jnp.float32)            # [BH, L, L]
    s = s - jnp.max(s, axis=-1, keepdims=True)
    e = jnp.exp(s)
    p = e * pl.reciprocal(jnp.sum(e, axis=-1, keepdims=True), approx=True)
    o = jnp.einsum("bqk,bkd->bqd", p, v,
                   preferred_element_type=jnp.float32)            # [BH, L, hd]
    o = jnp.swapaxes(o.reshape(B, HEADS, SEQ, HEAD_DIM), 1, 2)
    attn = o.reshape(B * SEQ, WIDTH)
    attn = jnp.dot(attn, wo_ref[0],
                   preferred_element_type=jnp.float32) + bo_ref[0]
    x = x + attn

    # MLP with QuickGELU (pre-LN)
    xn2 = _layernorm(x, ln2_g_ref[0], ln2_b_ref[0])
    h = jnp.dot(xn2, wfc_ref[0],
                preferred_element_type=jnp.float32) + bfc_ref[0]
    h = h * jax.nn.sigmoid(1.702 * h)
    h = jnp.dot(h, wpr_ref[0],
                preferred_element_type=jnp.float32) + bpr_ref[0]
    x = x + h

    x_scr[...] = x.reshape(B, SEQ, WIDTH)

    # ---------------- last step: ln_post(CLS) @ proj ---------------------
    @pl.when(layer == LAYERS - 1)
    def _head():
        cls_tok = x.reshape(B, SEQ, WIDTH)[:, 0, :]               # [B, D]
        cls_tok = _layernorm(cls_tok, ln_post_g_ref[...], ln_post_b_ref[...])
        out_ref[...] = jnp.dot(cls_tok, proj_ref[...],
                               preferred_element_type=jnp.float32)


# ------------------------------ wrapper ---------------------------------
def encode_image(image, params):
    """ImageCLIP.forward(image) == model.encode_image(image)."""
    B = image.shape[0]
    # NCHW -> flattened non-overlapping patches (pure layout plumbing).
    patches = image.reshape(B, CIN, GRID_P, PATCH, GRID_P, PATCH)
    patches = patches.transpose(0, 2, 4, 1, 3, 5).reshape(B * NPATCH,
                                                          PATCH_DIM)
    blk = params["blocks"]
    inputs = [
        patches, params["conv_w"], params["cls"], params["pos"],
        params["ln_pre_g"], params["ln_pre_b"],
        blk["ln1_g"], blk["ln1_b"], blk["wqkv"], blk["bqkv"],
        blk["wo"], blk["bo"], blk["ln2_g"], blk["ln2_b"],
        blk["wfc"], blk["bfc"], blk["wpr"], blk["bpr"],
        params["ln_post_g"], params["ln_post_b"], params["proj"],
    ]

    def fixed(shape):
        nd = len(shape)
        return pl.BlockSpec(tuple(shape), lambda l, nd=nd: (0,) * nd)

    def per_layer(shape):
        nd = len(shape)
        blk_shape = (1,) + tuple(shape[1:])
        return pl.BlockSpec(blk_shape,
                            lambda l, nd=nd: (l,) + (0,) * (nd - 1))

    in_specs = []
    for i, a in enumerate(inputs):
        in_specs.append(per_layer(a.shape) if 6 <= i < 18 else fixed(a.shape))

    return pl.pallas_call(
        encoder_kernel,
        out_shape=jax.ShapeDtypeStruct((B, OUT_DIM), jnp.float32),
        grid=(LAYERS,),
        in_specs=in_specs,
        out_specs=pl.BlockSpec((B, OUT_DIM), lambda l: (0, 0)),
        scratch_shapes=[pltpu.VMEM((B, SEQ, WIDTH), jnp.float32)],
        compiler_params=pltpu.CompilerParams(
            dimension_semantics=("arbitrary",)),
    )(*inputs)


# ----------------------- pure-JAX reference (self-check) ----------------
def encode_image_ref(image, params):
    B = image.shape[0]
    x = image.reshape(B, CIN, GRID_P, PATCH, GRID_P, PATCH)
    x = x.transpose(0, 2, 4, 1, 3, 5).reshape(B * NPATCH, PATCH_DIM)
    x = (x @ params["conv_w"]).reshape(B, NPATCH, WIDTH)
    cls = jnp.broadcast_to(params["cls"][None], (B, 1, WIDTH))
    x = jnp.concatenate([cls, x], axis=1) + params["pos"][None]
    x = _layernorm(x, params["ln_pre_g"], params["ln_pre_b"])
    blk = params["blocks"]
    for l in range(LAYERS):
        xn = _layernorm(x, blk["ln1_g"][l], blk["ln1_b"][l])
        qkv = xn @ blk["wqkv"][l] + blk["bqkv"][l]
        q, k, v = jnp.split(qkv, 3, axis=-1)
        q = q.reshape(B, SEQ, HEADS, HEAD_DIM).transpose(0, 2, 1, 3)
        k = k.reshape(B, SEQ, HEADS, HEAD_DIM).transpose(0, 2, 1, 3)
        v = v.reshape(B, SEQ, HEADS, HEAD_DIM).transpose(0, 2, 1, 3)
        s = jnp.einsum("bhqd,bhkd->bhqk", q, k) / math.sqrt(HEAD_DIM)
        p = jax.nn.softmax(s, axis=-1)
        o = jnp.einsum("bhqk,bhkd->bhqd", p, v)
        o = o.transpose(0, 2, 1, 3).reshape(B, SEQ, WIDTH)
        x = x + (o @ blk["wo"][l] + blk["bo"][l])
        xn2 = _layernorm(x, blk["ln2_g"][l], blk["ln2_b"][l])
        h = xn2 @ blk["wfc"][l] + blk["bfc"][l]
        h = h * jax.nn.sigmoid(1.702 * h)
        x = x + (h @ blk["wpr"][l] + blk["bpr"][l])
    cls_tok = _layernorm(x[:, 0, :], params["ln_post_g"], params["ln_post_b"])
    return cls_tok @ params["proj"]


# --------------------------- parameter init -----------------------------
def init_params(key):
    counter = [0]

    def nxt():
        counter[0] += 1
        return jax.random.fold_in(key, counter[0])

    def nrm(shape, scale=0.02):
        return (scale * jax.random.normal(nxt(), shape)).astype(jnp.float32)

    return {
        "conv_w": nrm((PATCH_DIM, WIDTH)),
        "cls": nrm((1, WIDTH)),
        "pos": nrm((SEQ, WIDTH)),
        "ln_pre_g": jnp.ones((1, WIDTH), jnp.float32),
        "ln_pre_b": jnp.zeros((1, WIDTH), jnp.float32),
        "ln_post_g": jnp.ones((1, WIDTH), jnp.float32),
        "ln_post_b": jnp.zeros((1, WIDTH), jnp.float32),
        "proj": nrm((WIDTH, OUT_DIM)),
        "blocks": {
            "ln1_g": jnp.ones((LAYERS, 1, WIDTH), jnp.float32),
            "ln1_b": jnp.zeros((LAYERS, 1, WIDTH), jnp.float32),
            "wqkv": nrm((LAYERS, WIDTH, 3 * WIDTH)),
            "bqkv": jnp.zeros((LAYERS, 1, 3 * WIDTH), jnp.float32),
            "wo": nrm((LAYERS, WIDTH, WIDTH)),
            "bo": jnp.zeros((LAYERS, 1, WIDTH), jnp.float32),
            "ln2_g": jnp.ones((LAYERS, 1, WIDTH), jnp.float32),
            "ln2_b": jnp.zeros((LAYERS, 1, WIDTH), jnp.float32),
            "wfc": nrm((LAYERS, WIDTH, 4 * WIDTH)),
            "bfc": jnp.zeros((LAYERS, 1, 4 * WIDTH), jnp.float32),
            "wpr": nrm((LAYERS, 4 * WIDTH, WIDTH)),
            "bpr": jnp.zeros((LAYERS, 1, WIDTH), jnp.float32),
        },
    }


if __name__ == "__main__":
    key = jax.random.PRNGKey(0)
    pkey, xkey = jax.random.split(key)
    params = init_params(pkey)

    # Input matching ImageCLIP.forward(image): NCHW image batch.
    image = jax.random.normal(xkey, (2, CIN, IMG, IMG), dtype=jnp.float32)

    out = jax.block_until_ready(encode_image(image, params))
    ref = jax.block_until_ready(encode_image_ref(image, params))

    assert out.shape == (2, OUT_DIM), out.shape
    assert bool(jnp.all(jnp.isfinite(out)))
    err = float(jnp.max(jnp.abs(out - ref)))
    assert bool(jnp.allclose(out, ref, atol=5e-3, rtol=5e-2)), err
    print("KERNEL_OK")
</pallas_src>

<mosaic_0001>
module attributes {stable_mosaic.version = 11 : i64} {
  func.func @encoder_kernel(%arg0: i32, %arg1: memref<8x192xf32, #tpu.memory_space<vmem>>, %arg2: memref<192x32xf32, #tpu.memory_space<vmem>>, %arg3: memref<1x32xf32, #tpu.memory_space<vmem>>, %arg4: memref<5x32xf32, #tpu.memory_space<vmem>>, %arg5: memref<1x32xf32, #tpu.memory_space<vmem>>, %arg6: memref<1x32xf32, #tpu.memory_space<vmem>>, %arg7: memref<1x1x32xf32, #tpu.memory_space<vmem>>, %arg8: memref<1x1x32xf32, #tpu.memory_space<vmem>>, %arg9: memref<1x32x96xf32, #tpu.memory_space<vmem>>, %arg10: memref<1x1x96xf32, #tpu.memory_space<vmem>>, %arg11: memref<1x32x32xf32, #tpu.memory_space<vmem>>, %arg12: memref<1x1x32xf32, #tpu.memory_space<vmem>>, %arg13: memref<1x1x32xf32, #tpu.memory_space<vmem>>, %arg14: memref<1x1x32xf32, #tpu.memory_space<vmem>>, %arg15: memref<1x32x128xf32, #tpu.memory_space<vmem>>, %arg16: memref<1x1x128xf32, #tpu.memory_space<vmem>>, %arg17: memref<1x128x32xf32, #tpu.memory_space<vmem>>, %arg18: memref<1x1x32xf32, #tpu.memory_space<vmem>>, %arg19: memref<1x32xf32, #tpu.memory_space<vmem>>, %arg20: memref<1x32xf32, #tpu.memory_space<vmem>>, %arg21: memref<32x16xf32, #tpu.memory_space<vmem>>, %arg22: memref<2x16xf32, #tpu.memory_space<vmem>>, %arg23: memref<2x5x32xf32, #tpu.memory_space<vmem>>) attributes {dimension_semantics = [#tpu.dimension_semantics<arbitrary>], iteration_bounds = array<i64: 2>, scalar_prefetch = 0 : i64, scratch_operands = 1 : i64, tpu.core_type = #tpu.core_type<tc>, window_params = [{pipeline_mode = #tpu.pipeline_mode<synchronous>, transform_indices = @transform_0, window_bounds = array<i64: 8, 192>}, {pipeline_mode = #tpu.pipeline_mode<synchronous>, transform_indices = @transform_1, window_bounds = array<i64: 192, 32>}, {pipeline_mode = #tpu.pipeline_mode<synchronous>, transform_indices = @transform_2, window_bounds = array<i64: 1, 32>}, {pipeline_mode = #tpu.pipeline_mode<synchronous>, transform_indices = @transform_3, window_bounds = array<i64: 5, 32>}, {pipeline_mode = #tpu.pipeline_mode<synchronous>, transform_indices = @transform_4, window_bounds = array<i64: 1, 32>}, {pipeline_mode = #tpu.pipeline_mode<synchronous>, transform_indices = @transform_5, window_bounds = array<i64: 1, 32>}, {transform_indices = @transform_6, window_bounds = array<i64: 1, 1, 32>}, {transform_indices = @transform_7, window_bounds = array<i64: 1, 1, 32>}, {transform_indices = @transform_8, window_bounds = array<i64: 1, 32, 96>}, {transform_indices = @transform_9, window_bounds = array<i64: 1, 1, 96>}, {transform_indices = @transform_10, window_bounds = array<i64: 1, 32, 32>}, {transform_indices = @transform_11, window_bounds = array<i64: 1, 1, 32>}, {transform_indices = @transform_12, window_bounds = array<i64: 1, 1, 32>}, {transform_indices = @transform_13, window_bounds = array<i64: 1, 1, 32>}, {transform_indices = @transform_14, window_bounds = array<i64: 1, 32, 128>}, {transform_indices = @transform_15, window_bounds = array<i64: 1, 1, 128>}, {transform_indices = @transform_16, window_bounds = array<i64: 1, 128, 32>}, {transform_indices = @transform_17, window_bounds = array<i64: 1, 1, 32>}, {pipeline_mode = #tpu.pipeline_mode<synchronous>, transform_indices = @transform_18, window_bounds = array<i64: 1, 32>}, {pipeline_mode = #tpu.pipeline_mode<synchronous>, transform_indices = @transform_19, window_bounds = array<i64: 1, 32>}, {pipeline_mode = #tpu.pipeline_mode<synchronous>, transform_indices = @transform_20, window_bounds = array<i64: 32, 16>}, {pipeline_mode = #tpu.pipeline_mode<synchronous>, transform_indices = @transform_21, window_bounds = array<i64: 2, 16>}]} {
    %c0_i32 = arith.constant 0 : i32
    %0 = arith.cmpi eq, %arg0, %c0_i32 : i32
    %1 = arith.extui %0 : i1 to i32
    %c0_i32_0 = arith.constant 0 : i32
    %2 = arith.cmpi ne, %1, %c0_i32_0 : i32
    scf.if %2 {
      %c0_63 = arith.constant 0 : index
      %c0_64 = arith.constant 0 : index
      %129 = vector.load %arg1[%c0_63, %c0_64] : memref<8x192xf32, #tpu.memory_space<vmem>>, vector<8x192xf32>
      %c0_65 = arith.constant 0 : index
      %c0_66 = arith.constant 0 : index
      %130 = vector.load %arg2[%c0_65, %c0_66] : memref<192x32xf32, #tpu.memory_space<vmem>>, vector<192x32xf32>
      %cst_67 = arith.constant dense<0.000000e+00> : vector<8x32xf32>
      %131 = tpu.matmul %129, %130, %cst_67 {dimension_numbers = #tpu.dot_dimension_numbers<[1], [0], [0], [1], [0, 0, 1, 1], [], []>} : vector<8x192xf32>, vector<192x32xf32>, vector<8x32xf32> -> vector<8x32xf32>
      %132 = vector.shape_cast %131 : vector<8x32xf32> to vector<2x4x32xf32>
      %c0_68 = arith.constant 0 : index
      %c0_69 = arith.constant 0 : index
      %133 = vector.load %arg3[%c0_68, %c0_69] : memref<1x32xf32, #tpu.memory_space<vmem>>, vector<1x32xf32>
      %134 = vector.shape_cast %133 : vector<1x32xf32> to vector<1x1x32xf32>
      %135 = vector.shape_cast %134 : vector<1x1x32xf32> to vector<1x1x32xf32>
      %136 = vector.broadcast %135 : vector<1x1x32xf32> to vector<2x1x32xf32>
      %137 = tpu.concatenate %136, %132 in 1 : vector<2x1x32xf32>, vector<2x4x32xf32> -> vector<2x5x32xf32>
      %c0_70 = arith.constant 0 : index
      %c0_71 = arith.constant 0 : index
      %138 = vector.load %arg4[%c0_70, %c0_71] : memref<5x32xf32, #tpu.memory_space<vmem>>, vector<5x32xf32>
      %139 = vector.shape_cast %138 : vector<5x32xf32> to vector<1x5x32xf32>
      %140 = vector.broadcast %139 : vector<1x5x32xf32> to vector<2x5x32xf32>
      %141 = arith.addf %137, %140 : vector<2x5x32xf32>
      %c0_72 = arith.constant 0 : index
      %c0_73 = arith.constant 0 : index
      %142 = vector.load %arg5[%c0_72, %c0_73] : memref<1x32xf32, #tpu.memory_space<vmem>>, vector<1x32xf32>
      %c0_74 = arith.constant 0 : index
      %c0_75 = arith.constant 0 : index
      %143 = vector.load %arg6[%c0_74, %c0_75] : memref<1x32xf32, #tpu.memory_space<vmem>>, vector<1x32xf32>
      %cst_76 = arith.constant dense<0.000000e+00> : vector<2x5xf32>
      %144 = vector.multi_reduction <add>, %141, %cst_76 [2] : vector<2x5x32xf32> to vector<2x5xf32>
      %145 = vector.shape_cast %144 : vector<2x5xf32> to vector<2x5x1xf32>
      %cst_77 = arith.constant 3.200000e+01 : f32
      %146 = vector.broadcast %cst_77 : f32 to vector<2x5x1xf32>
      %147 = arith.divf %145, %146 : vector<2x5x1xf32>
      %148 = vector.broadcast %147 : vector<2x5x1xf32> to vector<2x5x32xf32>
      %149 = arith.subf %141, %148 : vector<2x5x32xf32>
      %150 = arith.mulf %149, %149 : vector<2x5x32xf32>
      %cst_78 = arith.constant dense<0.000000e+00> : vector<2x5xf32>
      %151 = vector.multi_reduction <add>, %150, %cst_78 [2] : vector<2x5x32xf32> to vector<2x5xf32>
      %152 = vector.shape_cast %151 : vector<2x5xf32> to vector<2x5x1xf32>
      %cst_79 = arith.constant 3.200000e+01 : f32
      %153 = vector.broadcast %cst_79 : f32 to vector<2x5x1xf32>
      %154 = arith.divf %152, %153 : vector<2x5x1xf32>
      %155 = vector.broadcast %147 : vector<2x5x1xf32> to vector<2x5x32xf32>
      %156 = arith.subf %141, %155 : vector<2x5x32xf32>
      %cst_80 = arith.constant 9.99999974E-6 : f32
      %157 = vector.broadcast %cst_80 : f32 to vector<2x5x1xf32>
      %158 = arith.addf %154, %157 : vector<2x5x1xf32>
      %159 = math.rsqrt %158 : vector<2x5x1xf32>
      %160 = vector.broadcast %159 : vector<2x5x1xf32> to vector<2x5x32xf32>
      %161 = arith.mulf %156, %160 : vector<2x5x32xf32>
      %162 = vector.shape_cast %142 : vector<1x32xf32> to vector<1x1x32xf32>
      %163 = vector.broadcast %162 : vector<1x1x32xf32> to vector<2x5x32xf32>
      %164 = arith.mulf %161, %163 : vector<2x5x32xf32>
      %165 = vector.shape_cast %143 : vector<1x32xf32> to vector<1x1x32xf32>
      %166 = vector.broadcast %165 : vector<1x1x32xf32> to vector<2x5x32xf32>
      %167 = arith.addf %164, %166 : vector<2x5x32xf32>
      %c0_81 = arith.constant 0 : index
      %c0_82 = arith.constant 0 : index
      %c0_83 = arith.constant 0 : index
      %168 = vector.load %arg23[%c0_81, %c0_82, %c0_83] : memref<2x5x32xf32, #tpu.memory_space<vmem>>, vector<2x5x32xf32>
      tpu.vector_store %arg23[%c0_81, %c0_82, %c0_83], %167 {strides = array<i32>} : memref<2x5x32xf32, #tpu.memory_space<vmem>>, vector<2x5x32xf32>,
    } else {
    }
    %c0 = arith.constant 0 : index
    %c0_1 = arith.constant 0 : index
    %c0_2 = arith.constant 0 : index
    %3 = vector.load %arg23[%c0, %c0_1, %c0_2] : memref<2x5x32xf32, #tpu.memory_space<vmem>>, vector<2x5x32xf32>
    %4 = vector.shape_cast %3 : vector<2x5x32xf32> to vector<10x32xf32>
    %c0_3 = arith.constant 0 : index
    %c0_4 = arith.constant 0 : index
    %c0_5 = arith.constant 0 : index
    %5 = vector.load %arg7[%c0_3, %c0_4, %c0_5] : memref<1x1x32xf32, #tpu.memory_space<vmem>>, vector<1x1x32xf32>
    %6 = vector.shape_cast %5 : vector<1x1x32xf32> to vector<1x32xf32>
    %c0_6 = arith.constant 0 : index
    %c0_7 = arith.constant 0 : index
    %c0_8 = arith.constant 0 : index
    %7 = vector.load %arg8[%c0_6, %c0_7, %c0_8] : memref<1x1x32xf32, #tpu.memory_space<vmem>>, vector<1x1x32xf32>
    %8 = vector.shape_cast %7 : vector<1x1x32xf32> to vector<1x32xf32>
    %cst = arith.constant dense<0.000000e+00> : vector<10xf32>
    %9 = vector.multi_reduction <add>, %4, %cst [1] : vector<10x32xf32> to vector<10xf32>
    %10 = vector.shape_cast %9 : vector<10xf32> to vector<10x1xf32>
    %cst_9 = arith.constant 3.200000e+01 : f32
    %11 = vector.broadcast %cst_9 : f32 to vector<10x1xf32>
    %12 = arith.divf %10, %11 : vector<10x1xf32>
    %13 = vector.broadcast %12 : vector<10x1xf32> to vector<10x32xf32>
    %14 = arith.subf %4, %13 : vector<10x32xf32>
    %15 = arith.mulf %14, %14 : vector<10x32xf32>
    %cst_10 = arith.constant dense<0.000000e+00> : vector<10xf32>
    %16 = vector.multi_reduction <add>, %15, %cst_10 [1] : vector<10x32xf32> to vector<10xf32>
    %17 = vector.shape_cast %16 : vector<10xf32> to vector<10x1xf32>
    %cst_11 = arith.constant 3.200000e+01 : f32
    %18 = vector.broadcast %cst_11 : f32 to vector<10x1xf32>
    %19 = arith.divf %17, %18 : vector<10x1xf32>
    %20 = vector.broadcast %12 : vector<10x1xf32> to vector<10x32xf32>
    %21 = arith.subf %4, %20 : vector<10x32xf32>
    %cst_12 = arith.constant 9.99999974E-6 : f32
    %22 = vector.broadcast %cst_12 : f32 to vector<10x1xf32>
    %23 = arith.addf %19, %22 : vector<10x1xf32>
    %24 = math.rsqrt %23 : vector<10x1xf32>
    %25 = vector.broadcast %24 : vector<10x1xf32> to vector<10x32xf32>
    %26 = arith.mulf %21, %25 : vector<10x32xf32>
    %27 = vector.broadcast %6 : vector<1x32xf32> to vector<10x32xf32>
    %28 = arith.mulf %26, %27 : vector<10x32xf32>
    %29 = vector.broadcast %8 : vector<1x32xf32> to vector<10x32xf32>
    %30 = arith.addf %28, %29 : vector<10x32xf32>
    %c0_13 = arith.constant 0 : index
    %c0_14 = arith.constant 0 : index
    %c0_15 = arith.constant 0 : index
    %31 = vector.load %arg9[%c0_13, %c0_14, %c0_15] : memref<1x32x96xf32, #tpu.memory_space<vmem>>, vector<1x32x96xf32>
    %32 = vector.shape_cast %31 : vector<1x32x96xf32> to vector<32x96xf32>
    %cst_16 = arith.constant dense<0.000000e+00> : vector<10x96xf32>
    %33 = tpu.matmul %30, %32, %cst_16 {dimension_numbers = #tpu.dot_dimension_numbers<[1], [0], [0], [1], [0, 0, 1, 1], [], []>} : vector<10x32xf32>, vector<32x96xf32>, vector<10x96xf32> -> vector<10x96xf32>
    %c0_17 = arith.constant 0 : index
    %c0_18 = arith.constant 0 : index
    %c0_19 = arith.constant 0 : index
    %34 = vector.load %arg10[%c0_17, %c0_18, %c0_19] : memref<1x1x96xf32, #tpu.memory_space<vmem>>, vector<1x1x96xf32>
    %35 = vector.shape_cast %34 : vector<1x1x96xf32> to vector<1x96xf32>
    %36 = vector.broadcast %35 : vector<1x96xf32> to vector<10x96xf32>
    %37 = arith.addf %33, %36 : vector<10x96xf32>
    %38 = vector.extract_strided_slice %37 {offsets = [0, 0], sizes = [10, 32], strides = [1, 1]} : vector<10x96xf32> to vector<10x32xf32>
    %cst_20 = arith.constant 0.353553385 : f32
    %39 = vector.broadcast %cst_20 : f32 to vector<10x32xf32>
    %40 = arith.mulf %38, %39 : vector<10x32xf32>
    %41 = vector.shape_cast %40 : vector<10x32xf32> to vector<2x5x4x8xf32>
    %42 = tpu.transpose %41, [0, 2, 1, 3] : vector<2x5x4x8xf32> -> vector<2x4x5x8xf32>
    %43 = vector.shape_cast %42 : vector<2x4x5x8xf32> to vector<8x5x8xf32>
    %44 = vector.extract_strided_slice %37 {offsets = [0, 32], sizes = [10, 32], strides = [1, 1]} : vector<10x96xf32> to vector<10x32xf32>
    %45 = vector.shape_cast %44 : vector<10x32xf32> to vector<2x5x4x8xf32>
    %46 = tpu.transpose %45, [0, 2, 1, 3] : vector<2x5x4x8xf32> -> vector<2x4x5x8xf32>
    %47 = vector.shape_cast %46 : vector<2x4x5x8xf32> to vector<8x5x8xf32>
    %48 = vector.extract_strided_slice %37 {offsets = [0, 64], sizes = [10, 32], strides = [1, 1]} : vector<10x96xf32> to vector<10x32xf32>
    %49 = vector.shape_cast %48 : vector<10x32xf32> to vector<2x5x4x8xf32>
    %50 = tpu.transpose %49, [0, 2, 1, 3] : vector<2x5x4x8xf32> -> vector<2x4x5x8xf32>
    %51 = vector.shape_cast %50 : vector<2x4x5x8xf32> to vector<8x5x8xf32>
    "tpu.trace_start"() <{level = 10 : i32, message = "bqd,bkd->bqk"}> : () -> ()
    %cst_21 = arith.constant dense<0.000000e+00> : vector<8x5x5xf32>
    %52 = tpu.matmul %43, %47, %cst_21 {dimension_numbers = #tpu.dot_dimension_numbers<[2], [2], [1], [1], [0, 0, 0, 1, 1, 1], [0], [0]>} : vector<8x5x8xf32>, vector<8x5x8xf32>, vector<8x5x5xf32> -> vector<8x5x5xf32>
    "tpu.trace_stop"() : () -> ()
    %cst_22 = arith.constant dense<0xFF800000> : vector<8x5xf32>
    %53 = vector.multi_reduction <maximumf>, %52, %cst_22 [2] : vector<8x5x5xf32> to vector<8x5xf32>
    %54 = vector.shape_cast %53 : vector<8x5xf32> to vector<8x5x1xf32>
    %55 = vector.broadcast %54 : vector<8x5x1xf32> to vector<8x5x5xf32>
    %56 = arith.subf %52, %55 : vector<8x5x5xf32>
    %57 = math.exp %56 : vector<8x5x5xf32>
    %cst_23 = arith.constant dense<0.000000e+00> : vector<8x5xf32>
    %58 = vector.multi_reduction <add>, %57, %cst_23 [2] : vector<8x5x5xf32> to vector<8x5xf32>
    %59 = vector.shape_cast %58 : vector<8x5xf32> to vector<8x5x1xf32>
    %60 = tpu.reciprocal %59 {approx = true} : vector<8x5x1xf32> -> vector<8x5x1xf32>
    %61 = vector.broadcast %60 : vector<8x5x1xf32> to vector<8x5x5xf32>
    %62 = arith.mulf %57, %61 : vector<8x5x5xf32>
    "tpu.trace_start"() <{level = 10 : i32, message = "bqk,bkd->bqd"}> : () -> ()
    %cst_24 = arith.constant dense<0.000000e+00> : vector<8x5x8xf32>
    %63 = tpu.matmul %62, %51, %cst_24 {dimension_numbers = #tpu.dot_dimension_numbers<[2], [1], [1], [2], [0, 0, 0, 1, 1, 2], [0], [0]>} : vector<8x5x5xf32>, vector<8x5x8xf32>, vector<8x5x8xf32> -> vector<8x5x8xf32>
    "tpu.trace_stop"() : () -> ()
    %64 = vector.shape_cast %63 : vector<8x5x8xf32> to vector<2x4x5x8xf32>
    %65 = tpu.transpose %64, [0, 2, 1, 3] : vector<2x4x5x8xf32> -> vector<2x5x4x8xf32>
    %66 = vector.shape_cast %65 : vector<2x5x4x8xf32> to vector<10x32xf32>
    %c0_25 = arith.constant 0 : index
    %c0_26 = arith.constant 0 : index
    %c0_27 = arith.constant 0 : index
    %67 = vector.load %arg11[%c0_25, %c0_26, %c0_27] : memref<1x32x32xf32, #tpu.memory_space<vmem>>, vector<1x32x32xf32>
    %68 = vector.shape_cast %67 : vector<1x32x32xf32> to vector<32x32xf32>
    %cst_28 = arith.constant dense<0.000000e+00> : vector<10x32xf32>
    %69 = tpu.matmul %66, %68, %cst_28 {dimension_numbers = #tpu.dot_dimension_numbers<[1], [0], [0], [1], [0, 0, 1, 1], [], []>} : vector<10x32xf32>, vector<32x32xf32>, vector<10x32xf32> -> vector<10x32xf32>
    %c0_29 = arith.constant 0 : index
    %c0_30 = arith.constant 0 : index
    %c0_31 = arith.constant 0 : index
    %70 = vector.load %arg12[%c0_29, %c0_30, %c0_31] : memref<1x1x32xf32, #tpu.memory_space<vmem>>, vector<1x1x32xf32>
    %71 = vector.shape_cast %70 : vector<1x1x32xf32> to vector<1x32xf32>
    %72 = vector.broadcast %71 : vector<1x32xf32> to vector<10x32xf32>
    %73 = arith.addf %69, %72 : vector<10x32xf32>
    %74 = arith.addf %4, %73 : vector<10x32xf32>
    %c0_32 = arith.constant 0 : index
    %c0_33 = arith.constant 0 : index
    %c0_34 = arith.constant 0 : index
    %75 = vector.load %arg13[%c0_32, %c0_33, %c0_34] : memref<1x1x32xf32, #tpu.memory_space<vmem>>, vector<1x1x32xf32>
    %76 = vector.shape_cast %75 : vector<1x1x32xf32> to vector<1x32xf32>
    %c0_35 = arith.constant 0 : index
    %c0_36 = arith.constant 0 : index
    %c0_37 = arith.constant 0 : index
    %77 = vector.load %arg14[%c0_35, %c0_36, %c0_37] : memref<1x1x32xf32, #tpu.memory_space<vmem>>, vector<1x1x32xf32>
    %78 = vector.shape_cast %77 : vector<1x1x32xf32> to vector<1x32xf32>
    %cst_38 = arith.constant dense<0.000000e+00> : vector<10xf32>
    %79 = vector.multi_reduction <add>, %74, %cst_38 [1] : vector<10x32xf32> to vector<10xf32>
    %80 = vector.shape_cast %79 : vector<10xf32> to vector<10x1xf32>
    %cst_39 = arith.constant 3.200000e+01 : f32
    %81 = vector.broadcast %cst_39 : f32 to vector<10x1xf32>
    %82 = arith.divf %80, %81 : vector<10x1xf32>
    %83 = vector.broadcast %82 : vector<10x1xf32> to vector<10x32xf32>
    %84 = arith.subf %74, %83 : vector<10x32xf32>
    %85 = arith.mulf %84, %84 : vector<10x32xf32>
    %cst_40 = arith.constant dense<0.000000e+00> : vector<10xf32>
    %86 = vector.multi_reduction <add>, %85, %cst_40 [1] : vector<10x32xf32> to vector<10xf32>
    %87 = vector.shape_cast %86 : vector<10xf32> to vector<10x1xf32>
    %cst_41 = arith.constant 3.200000e+01 : f32
    %88 = vector.broadcast %cst_41 : f32 to vector<10x1xf32>
    %89 = arith.divf %87, %88 : vector<10x1xf32>
    %90 = vector.broadcast %82 : vector<10x1xf32> to vector<10x32xf32>
    %91 = arith.subf %74, %90 : vector<10x32xf32>
    %cst_42 = arith.constant 9.99999974E-6 : f32
    %92 = vector.broadcast %cst_42 : f32 to vector<10x1xf32>
    %93 = arith.addf %89, %92 : vector<10x1xf32>
    %94 = math.rsqrt %93 : vector<10x1xf32>
    %95 = vector.broadcast %94 : vector<10x1xf32> to vector<10x32xf32>
    %96 = arith.mulf %91, %95 : vector<10x32xf32>
    %97 = vector.broadcast %76 : vector<1x32xf32> to vector<10x32xf32>
    %98 = arith.mulf %96, %97 : vector<10x32xf32>
    %99 = vector.broadcast %78 : vector<1x32xf32> to vector<10x32xf32>
    %100 = arith.addf %98, %99 : vector<10x32xf32>
    %c0_43 = arith.constant 0 : index
    %c0_44 = arith.constant 0 : index
    %c0_45 = arith.constant 0 : index
    %101 = vector.load %arg15[%c0_43, %c0_44, %c0_45] : memref<1x32x128xf32, #tpu.memory_space<vmem>>, vector<1x32x128xf32>
    %102 = vector.shape_cast %101 : vector<1x32x128xf32> to vector<32x128xf32>
    %cst_46 = arith.constant dense<0.000000e+00> : vector<10x128xf32>
    %103 = tpu.matmul %100, %102, %cst_46 {dimension_numbers = #tpu.dot_dimension_numbers<[1], [0], [0], [1], [0, 0, 1, 1], [], []>} : vector<10x32xf32>, vector<32x128xf32>, vector<10x128xf32> -> vector<10x128xf32>
    %c0_47 = arith.constant 0 : index
    %c0_48 = arith.constant 0 : index
    %c0_49 = arith.constant 0 : index
    %104 = vector.load %arg16[%c0_47, %c0_48, %c0_49] : memref<1x1x128xf32, #tpu.memory_space<vmem>>, vector<1x1x128xf32>
    %105 = vector.shape_cast %104 : vector<1x1x128xf32> to vector<1x128xf32>
    %106 = vector.broadcast %105 : vector<1x128xf32> to vector<10x128xf32>
    %107 = arith.addf %103, %106 : vector<10x128xf32>
    %cst_50 = arith.constant 1.702000e+00 : f32
    %108 = vector.broadcast %cst_50 : f32 to vector<10x128xf32>
    %109 = arith.mulf %108, %107 : vector<10x128xf32>
    %110 = arith.negf %109 : vector<10x128xf32>
    %111 = math.exp %110 : vector<10x128xf32>
    %cst_51 = arith.constant 1.000000e+00 : f32
    %112 = vector.broadcast %cst_51 : f32 to vector<10x128xf32>
    %113 = arith.addf %112, %111 : vector<10x128xf32>
    %114 = arith.divf %112, %113 : vector<10x128xf32>
    %115 = arith.mulf %107, %114 : vector<10x128xf32>
    %c0_52 = arith.constant 0 : index
    %c0_53 = arith.constant 0 : index
    %c0_54 = arith.constant 0 : index
    %116 = vector.load %arg17[%c0_52, %c0_53, %c0_54] : memref<1x128x32xf32, #tpu.memory_space<vmem>>, vector<1x128x32xf32>
    %117 = vector.shape_cast %116 : vector<1x128x32xf32> to vector<128x32xf32>
    %cst_55 = arith.constant dense<0.000000e+00> : vector<10x32xf32>
    %118 = tpu.matmul %115, %117, %cst_55 {dimension_numbers = #tpu.dot_dimension_numbers<[1], [0], [0], [1], [0, 0, 1, 1], [], []>} : vector<10x128xf32>, vector<128x32xf32>, vector<10x32xf32> -> vector<10x32xf32>
    %c0_56 = arith.constant 0 : index
    %c0_57 = arith.constant 0 : index
    %c0_58 = arith.constant 0 : index
    %119 = vector.load %arg18[%c0_56, %c0_57, %c0_58] : memref<1x1x32xf32, #tpu.memory_space<vmem>>, vector<1x1x32xf32>
    %120 = vector.shape_cast %119 : vector<1x1x32xf32> to vector<1x32xf32>
    %121 = vector.broadcast %120 : vector<1x32xf32> to vector<10x32xf32>
    %122 = arith.addf %118, %121 : vector<10x32xf32>
    %123 = arith.addf %74, %122 : vector<10x32xf32>
    %124 = vector.shape_cast %123 : vector<10x32xf32> to vector<2x5x32xf32>
    %c0_59 = arith.constant 0 : index
    %c0_60 = arith.constant 0 : index
    %c0_61 = arith.constant 0 : index
    %125 = vector.load %arg23[%c0_59, %c0_60, %c0_61] : memref<2x5x32xf32, #tpu.memory_space<vmem>>, vector<2x5x32xf32>
    tpu.vector_store %arg23[%c0_59, %c0_60, %c0_61], %124 {strides = array<i32>} : memref<2x5x32xf32, #tpu.memory_space<vmem>>, vector<2x5x32xf32>,
    %c1_i32 = arith.constant 1 : i32
    %126 = arith.cmpi eq, %arg0, %c1_i32 : i32
    %127 = arith.extui %126 : i1 to i32
    %c0_i32_62 = arith.constant 0 : i32
    %128 = arith.cmpi ne, %127, %c0_i32_62 : i32
    scf.if %128 {
      %129 = vector.shape_cast %123 : vector<10x32xf32> to vector<2x5x32xf32>
      %130 = vector.extract_strided_slice %129 {offsets = [0, 0, 0], sizes = [2, 1, 32], strides = [1, 1, 1]} : vector<2x5x32xf32> to vector<2x1x32xf32>
      %131 = vector.shape_cast %130 : vector<2x1x32xf32> to vector<2x32xf32>
      %c0_63 = arith.constant 0 : index
      %c0_64 = arith.constant 0 : index
      %132 = vector.load %arg19[%c0_63, %c0_64] : memref<1x32xf32, #tpu.memory_space<vmem>>, vector<1x32xf32>
      %c0_65 = arith.constant 0 : index
      %c0_66 = arith.constant 0 : index
      %133 = vector.load %arg20[%c0_65, %c0_66] : memref<1x32xf32, #tpu.memory_space<vmem>>, vector<1x32xf32>
      %cst_67 = arith.constant dense<0.000000e+00> : vector<2xf32>
      %134 = vector.multi_reduction <add>, %131, %cst_67 [1] : vector<2x32xf32> to vector<2xf32>
      %135 = vector.shape_cast %134 : vector<2xf32> to vector<2x1xf32>
      %cst_68 = arith.constant 3.200000e+01 : f32
      %136 = vector.broadcast %cst_68 : f32 to vector<2x1xf32>
      %137 = arith.divf %135, %136 : vector<2x1xf32>
      %138 = vector.broadcast %137 : vector<2x1xf32> to vector<2x32xf32>
      %139 = arith.subf %131, %138 : vector<2x32xf32>
      %140 = arith.mulf %139, %139 : vector<2x32xf32>
      %cst_69 = arith.constant dense<0.000000e+00> : vector<2xf32>
      %141 = vector.multi_reduction <add>, %140, %cst_69 [1] : vector<2x32xf32> to vector<2xf32>
      %142 = vector.shape_cast %141 : vector<2xf32> to vector<2x1xf32>
      %cst_70 = arith.constant 3.200000e+01 : f32
      %143 = vector.broadcast %cst_70 : f32 to vector<2x1xf32>
      %144 = arith.divf %142, %143 : vector<2x1xf32>
      %145 = vector.broadcast %137 : vector<2x1xf32> to vector<2x32xf32>
      %146 = arith.subf %131, %145 : vector<2x32xf32>
      %cst_71 = arith.constant 9.99999974E-6 : f32
      %147 = vector.broadcast %cst_71 : f32 to vector<2x1xf32>
      %148 = arith.addf %144, %147 : vector<2x1xf32>
      %149 = math.rsqrt %148 : vector<2x1xf32>
      %150 = vector.broadcast %149 : vector<2x1xf32> to vector<2x32xf32>
      %151 = arith.mulf %146, %150 : vector<2x32xf32>
      %152 = vector.broadcast %132 : vector<1x32xf32> to vector<2x32xf32>
      %153 = arith.mulf %151, %152 : vector<2x32xf32>
      %154 = vector.broadcast %133 : vector<1x32xf32> to vector<2x32xf32>
      %155 = arith.addf %153, %154 : vector<2x32xf32>
      %c0_72 = arith.constant 0 : index
      %c0_73 = arith.constant 0 : index
      %156 = vector.load %arg21[%c0_72, %c0_73] : memref<32x16xf32, #tpu.memory_space<vmem>>, vector<32x16xf32>
      %cst_74 = arith.constant dense<0.000000e+00> : vector<2x16xf32>
      %157 = tpu.matmul %155, %156, %cst_74 {dimension_numbers = #tpu.dot_dimension_numbers<[1], [0], [0], [1], [0, 0, 1, 1], [], []>} : vector<2x32xf32>, vector<32x16xf32>, vector<2x16xf32> -> vector<2x16xf32>
      %c0_75 = arith.constant 0 : index
      %c0_76 = arith.constant 0 : index
      %158 = vector.load %arg22[%c0_75, %c0_76] : memref<2x16xf32, #tpu.memory_space<vmem>>, vector<2x16xf32>
      tpu.vector_store %arg22[%c0_75, %c0_76], %157 {strides = array<i32>} : memref<2x16xf32, #tpu.memory_space<vmem>>, vector<2x16xf32>,
    } else {
    }
    return
  }
  func.func @transform_0(%arg0: i32) -> (i32, i32) {
    %c0_i32 = arith.constant 0 : i32
    %c0_i32_0 = arith.constant 0 : i32
    %c0_i32_1 = arith.constant 0 : i32
    return %c0_i32, %c0_i32_0 : i32, i32
  }
  func.func @transform_1(%arg0: i32) -> (i32, i32) {
    %c0_i32 = arith.constant 0 : i32
    %c0_i32_0 = arith.constant 0 : i32
    %c0_i32_1 = arith.constant 0 : i32
    return %c0_i32, %c0_i32_0 : i32, i32
  }
  func.func @transform_2(%arg0: i32) -> (i32, i32) {
    %c0_i32 = arith.constant 0 : i32
    %c0_i32_0 = arith.constant 0 : i32
    %c0_i32_1 = arith.constant 0 : i32
    return %c0_i32, %c0_i32_0 : i32, i32
  }
  func.func @transform_3(%arg0: i32) -> (i32, i32) {
    %c0_i32 = arith.constant 0 : i32
    %c0_i32_0 = arith.constant 0 : i32
    %c0_i32_1 = arith.constant 0 : i32
    return %c0_i32, %c0_i32_0 : i32, i32
  }
  func.func @transform_4(%arg0: i32) -> (i32, i32) {
    %c0_i32 = arith.constant 0 : i32
    %c0_i32_0 = arith.constant 0 : i32
    %c0_i32_1 = arith.constant 0 : i32
    return %c0_i32, %c0_i32_0 : i32, i32
  }
  func.func @transform_5(%arg0: i32) -> (i32, i32) {
    %c0_i32 = arith.constant 0 : i32
    %c0_i32_0 = arith.constant 0 : i32
    %c0_i32_1 = arith.constant 0 : i32
    return %c0_i32, %c0_i32_0 : i32, i32
  }
  func.func @transform_6(%arg0: i32) -> (i32, i32, i32) {
    %c0_i32 = arith.constant 0 : i32
    %c0_i32_0 = arith.constant 0 : i32
    %c0_i32_1 = arith.constant 0 : i32
    return %arg0, %c0_i32, %c0_i32_0 : i32, i32, i32
  }
  func.func @transform_7(%arg0: i32) -> (i32, i32, i32) {
    %c0_i32 = arith.constant 0 : i32
    %c0_i32_0 = arith.constant 0 : i32
    %c0_i32_1 = arith.constant 0 : i32
    return %arg0, %c0_i32, %c0_i32_0 : i32, i32, i32
  }
  func.func @transform_8(%arg0: i32) -> (i32, i32, i32) {
    %c0_i32 = arith.constant 0 : i32
    %c0_i32_0 = arith.constant 0 : i32
    %c0_i32_1 = arith.constant 0 : i32
    return %arg0, %c0_i32, %c0_i32_0 : i32, i32, i32
  }
  func.func @transform_9(%arg0: i32) -> (i32, i32, i32) {
    %c0_i32 = arith.constant 0 : i32
    %c0_i32_0 = arith.constant 0 : i32
    %c0_i32_1 = arith.constant 0 : i32
    return %arg0, %c0_i32, %c0_i32_0 : i32, i32, i32
  }
  func.func @transform_10(%arg0: i32) -> (i32, i32, i32) {
    %c0_i32 = arith.constant 0 : i32
    %c0_i32_0 = arith.constant 0 : i32
    %c0_i32_1 = arith.constant 0 : i32
    return %arg0, %c0_i32, %c0_i32_0 : i32, i32, i32
  }
  func.func @transform_11(%arg0: i32) -> (i32, i32, i32) {
    %c0_i32 = arith.constant 0 : i32
    %c0_i32_0 = arith.constant 0 : i32
    %c0_i32_1 = arith.constant 0 : i32
    return %arg0, %c0_i32, %c0_i32_0 : i32, i32, i32
  }
  func.func @transform_12(%arg0: i32) -> (i32, i32, i32) {
    %c0_i32 = arith.constant 0 : i32
    %c0_i32_0 = arith.constant 0 : i32
    %c0_i32_1 = arith.constant 0 : i32
    return %arg0, %c0_i32, %c0_i32_0 : i32, i32, i32
  }
  func.func @transform_13(%arg0: i32) -> (i32, i32, i32) {
    %c0_i32 = arith.constant 0 : i32
    %c0_i32_0 = arith.constant 0 : i32
    %c0_i32_1 = arith.constant 0 : i32
    return %arg0, %c0_i32, %c0_i32_0 : i32, i32, i32
  }
  func.func @transform_14(%arg0: i32) -> (i32, i32, i32) {
    %c0_i32 = arith.constant 0 : i32
    %c0_i32_0 = arith.constant 0 : i32
    %c0_i32_1 = arith.constant 0 : i32
    return %arg0, %c0_i32, %c0_i32_0 : i32, i32, i32
  }
  func.func @transform_15(%arg0: i32) -> (i32, i32, i32) {
    %c0_i32 = arith.constant 0 : i32
    %c0_i32_0 = arith.constant 0 : i32
    %c0_i32_1 = arith.constant 0 : i32
    return %arg0, %c0_i32, %c0_i32_0 : i32, i32, i32
  }
  func.func @transform_16(%arg0: i32) -> (i32, i32, i32) {
    %c0_i32 = arith.constant 0 : i32
    %c0_i32_0 = arith.constant 0 : i32
    %c0_i32_1 = arith.constant 0 : i32
    return %arg0, %c0_i32, %c0_i32_0 : i32, i32, i32
  }
  func.func @transform_17(%arg0: i32) -> (i32, i32, i32) {
    %c0_i32 = arith.constant 0 : i32
    %c0_i32_0 = arith.constant 0 : i32
    %c0_i32_1 = arith.constant 0 : i32
    return %arg0, %c0_i32, %c0_i32_0 : i32, i32, i32
  }
  func.func @transform_18(%arg0: i32) -> (i32, i32) {
    %c0_i32 = arith.constant 0 : i32
    %c0_i32_0 = arith.constant 0 : i32
    %c0_i32_1 = arith.constant 0 : i32
    return %c0_i32, %c0_i32_0 : i32, i32
  }
  func.func @transform_19(%arg0: i32) -> (i32, i32) {
    %c0_i32 = arith.constant 0 : i32
    %c0_i32_0 = arith.constant 0 : i32
    %c0_i32_1 = arith.constant 0 : i32
    return %c0_i32, %c0_i32_0 : i32, i32
  }
  func.func @transform_20(%arg0: i32) -> (i32, i32) {
    %c0_i32 = arith.constant 0 : i32
    %c0_i32_0 = arith.constant 0 : i32
    %c0_i32_1 = arith.constant 0 : i32
    return %c0_i32, %c0_i32_0 : i32, i32
  }
  func.func @transform_21(%arg0: i32) -> (i32, i32) {
    %c0_i32 = arith.constant 0 : i32
    %c0_i32_0 = arith.constant 0 : i32
    %c0_i32_1 = arith.constant 0 : i32
    return %c0_i32, %c0_i32_0 : i32, i32
  }
}

</mosaic_0001>

<bundles_post_ra>
// kernel: tpu_custom_call.1
= control target key start
LH: loop header
LB: loop body
LE: loop exit
PB: predicated region body
PF: predicated region fallthrough
CT: control target
= control target key end

     0   :  { %s7066_s0 = inlined_call_operand.vmem [shape: f32[8,192], index: 0, kind: input, shape index: {}]   ;;  %s7067_s1 = inlined_call_operand.vmem [shape: f32[192,32], index: 1, kind: input, shape index: {}]   ;;  %s7068_s2 = inlined_call_operand.vmem [shape: f32[1,32], index: 2, kind: input, shape index: {}]   ;;  %s7069_s3 = inlined_call_operand.vmem [shape: f32[5,32], index: 3, kind: input, shape index: {}]   ;;  %s7070_s4 = inlined_call_operand.vmem [shape: f32[1,32], index: 4, kind: input, shape index: {}]   ;;  %s7071_s5 = inlined_call_operand.vmem [shape: f32[1,32], index: 5, kind: input, shape index: {}]   ;;  %s7072_s6 = inlined_call_operand.vmem [shape: f32[2,1,32], index: 6, kind: input, shape index: {}]   ;;  %s7073_s7 = inlined_call_operand.vmem [shape: f32[2,1,32], index: 7, kind: input, shape index: {}]   ;;  %s7074_s8 = inlined_call_operand.vmem [shape: f32[2,32,96], index: 8, kind: input, shape index: {}]   ;;  %s7075_s9 = inlined_call_operand.vmem [shape: f32[2,1,96], index: 9, kind: input, shape index: {}]   ;;  %s7076_s10 = inlined_call_operand.vmem [shape: f32[2,32,32], index: 10, kind: input, shape index: {}]   ;;  %s7077_s11 = inlined_call_operand.vmem [shape: f32[2,1,32], index: 11, kind: input, shape index: {}]   ;;  %s7078_s12 = inlined_call_operand.vmem [shape: f32[2,1,32], index: 12, kind: input, shape index: {}]   ;;  %s7079_s13 = inlined_call_operand.vmem [shape: f32[2,1,32], index: 13, kind: input, shape index: {}]   ;;  %s7080_s14 = inlined_call_operand.vmem [shape: f32[2,32,128], index: 14, kind: input, shape index: {}]   ;;  %s7081_s15 = inlined_call_operand.vmem [shape: f32[2,1,128], index: 15, kind: input, shape index: {}]   ;;  %s7082_s16 = inlined_call_operand.vmem [shape: f32[2,128,32], index: 16, kind: input, shape index: {}]   ;;  %s7083_s17 = inlined_call_operand.vmem [shape: f32[2,1,32], index: 17, kind: input, shape index: {}]   ;;  %s7084_s18 = inlined_call_operand.vmem [shape: f32[1,32], index: 18, kind: input, shape index: {}]   ;;  %s7085_s19 = inlined_call_operand.vmem [shape: f32[1,32], index: 19, kind: input, shape index: {}]   ;;  %s7086_s20 = inlined_call_operand.vmem [shape: f32[32,16], index: 20, kind: input, shape index: {}]   ;;  %s7087_s21 = inlined_call_operand.hbm [shape: f32[2,16], index: 21, kind: output, shape index: {}]  }
   0x1   :  { %7098 = sst [smem:[#allocation10_spill]] %s7066_s0 }
   0x2   :  { %7099 = sst [smem:[#allocation11_spill]] %s7067_s1 }
   0x3   :  { %7100 = sst [smem:[#allocation12_spill]] %s7068_s2 }
   0x4   :  { %7101 = sst [smem:[#allocation13_spill]] %s7069_s3 }
   0x5   :  { %7102 = sst [smem:[#allocation14_spill]] %s7070_s4 }
   0x6   :  { %7103 = sst [smem:[#allocation15_spill]] %s7071_s5 }
   0x7   :  { %7104 = sst [smem:[#allocation16_spill]] %s7074_s8 }
   0x8   :  { %7105 = sst [smem:[#allocation17_spill]] %s7076_s10 }
   0x9   :  { %7106 = sst [smem:[#allocation18_spill]] %s7084_s18 }
   0xa   :  { %7107 = sst [smem:[#allocation19_spill]] %s7085_s19 }
   0xb   :  { %7108 = sst [smem:[#allocation20_spill]] %s7086_s20 }
   0xc   :  { %7109 = sst [smem:[#allocation21_spill]] %s7087_s21 }
   0xd   :  { %26 = vsyncpa [#allocation4], 0  ;;  %s6004_s2 = smov 0  }
   0xe LB: > { %7110 = sst [smem:[#allocation6_spill]] %s5875_s2  ;;  %s6010_s25 = sadd.s32 4294967295, %s5875_s2   ;;  %s5875_s2 = sphi %s6004_s2, %s32_s2  }
   0xf   : > { %p5441_p0 = scmp.ge.s32.totalorder %s5875_s2, 1  ;;  %p677_p1 = scmp.lt.s32.totalorder %s5875_s2, 3 }
  0x11   : > { %p678_p2 = pnand %p5441_p0, %p677_p1 }
  0x13   : > { %681 = sbr.rel (%p678_p2) target bundleno = 3892 (0xf34), region = 104 }
  0x18   : > { %p771_p3 = scmp.lt.s32.totalorder %s6010_s25, 1  ;;  %s7111_s8 = sld [smem:[#allocation16_spill]] }
  0x19   : > { %s7112_s10 = sld [smem:[#allocation17_spill]]  ;;  %p5450_p4 = scmp.ne.s32.totalorder %s6010_s25, 0 }
  0x1a   : > { %s6016_s26 = scalar_select %p771_p3, %s6010_s25, 1 }
  0x1b   : > { %s7113_s1 = sld [smem:[#allocation11_spill]] (!%p5450_p4) }
  0x1c   : > { %s5518_s30 = sshll.u32 %s6016_s26, 5  ;;  %s795_s18 = scalar_lea.vmem %s7078_s12, %s6016_s26 }
  0x1d   : > { %s798_s23 = scalar_lea.vmem %s7079_s13, %s6016_s26  ;;  %s5521_s20 = sshll.u32 %s6016_s26, 7 }
  0x1e   : > { %s6034_s27 = scalar_lea.vmem %s7111_s8, %s5518_s30  ;;  %s6056_s8 = scalar_lea.vmem %s7080_s14, %s5518_s30 }
  0x1f   : > { %s6039_s21 = scalar_lea.vmem %s7112_s10, %s5518_s30  ;;  %s806_s10 = scalar_lea.vmem %s7081_s15, %s6016_s26 }
  0x20   : > { %s6066_s29 = scalar_lea.vmem %s7082_s16, %s5521_s20  ;;  %s814_s5 = scalar_lea.vmem %s7083_s17, %s6016_s26 }
  0x21   : > { %818 = sbr.rel (%p5450_p4) target bundleno = 598 (0x256), region = 108  ;;  %s7114_s24 = sld [smem:[#allocation10_spill]] (!%p5450_p4) }
  0x22   : > { %s7115_s0 = sld [smem:[#allocation12_spill]] (!%p5450_p4) }
  0x23   : > { %s7116_s2 = sld [smem:[#allocation13_spill]] (!%p5450_p4) }
  0x24   : > { %s7117_s19 = sld [smem:[#allocation14_spill]] (!%p5450_p4) }
  0x26   : > { %v836_v0 = vld [vmem:[%s7113_s1 + $0x78] sm:$0xff]  ;;  %v5877_v1 = vmov 0.0   ;;  %v835_v2 = vld [vmem:[%s7113_s1 + $0x70] sm:$0xff]  ;;  %v834_v3 = vld [vmem:[%s7113_s1 + $0x68] sm:$0xff]  ;;  %vm845_vm0 = vcmask 523264   ;;  %vm926_vm1 = vcmask 1040384  }
  0x27   : > { %849 = vmatprep.subr.mxu0 %v5877_v1  ;;  %v833_v4 = vld [vmem:[%s7113_s1 + $0x60] sm:$0xff]  ;;  %v832_v5 = vld [vmem:[%s7113_s1 + $0x58] sm:$0xff]  ;;  %v820_v6 = vld [vmem:[%s7114_s24 + $0x8] sm:$0xff]  ;;  %vm934_vm2 = vcmask 258048  }
  0x28   : > { %850 = vmatpush1.msra.mxu0 %v836_v0  ;;  %v831_v7 = vld [vmem:[%s7113_s1 + $0x50] sm:$0xff]  ;;  %5451 = vmatprep.mubr.msk.f32.mxu0 %vm845_vm0, %v820_v6  ;;  %v830_v8 = vld [vmem:[%s7113_s1 + $0x48] sm:$0xff]  ;;  %v829_v9 = vld [vmem:[%s7113_s1 + $0x40] sm:$0xff] }
  0x29   : > { %851 = vmatprep.subr.mxu0 %v5877_v1  ;;  %v828_v10 = vld [vmem:[%s7113_s1 + $0x38] sm:$0xff]  ;;  %v827_v11 = vld [vmem:[%s7113_s1 + $0x30] sm:$0xff]  ;;  %v826_v12 = vld [vmem:[%s7113_s1 + $0x28] sm:$0xff] }
  0x2a   : > { %852 = vmatpush1.msra.mxu0 %v835_v2  ;;  %v825_v13 = vld [vmem:[%s7113_s1 + $0x20] sm:$0xff]  ;;  %v824_v14 = vld [vmem:[%s7113_s1 + $0x18] sm:$0xff]  ;;  %v823_v15 = vld [vmem:[%s7113_s1 + $0x10] sm:$0xff] }
  0x2b   : > { %853 = vmatprep.subr.mxu0 %v5877_v1  ;;  %v822_v16 = vld [vmem:[%s7113_s1 + $0x8] sm:$0xff]  ;;  %v821_v17 = vld [vmem:[%s7113_s1] sm:$0xff]  ;;  %v844_v18 = vld [vmem:[%s7113_s1 + $0xb8] sm:$0xff] }
  0x2c   : > { %854 = vmatpush1.msra.mxu0 %v834_v3  ;;  %v843_v19 = vld [vmem:[%s7113_s1 + $0xb0] sm:$0xff]  ;;  %v842_v20 = vld [vmem:[%s7113_s1 + $0xa8] sm:$0xff]  ;;  %v841_v21 = vld [vmem:[%s7113_s1 + $0xa0] sm:$0xff] }
  0x2d   : > { %855 = vmatprep.subr.mxu0 %v5877_v1  ;;  %v840_v22 = vld [vmem:[%s7113_s1 + $0x98] sm:$0xff]  ;;  %v839_v23 = vld [vmem:[%s7113_s1 + $0x90] sm:$0xff]  ;;  %v838_v24 = vld [vmem:[%s7113_s1 + $0x88] sm:$0xff] }
  0x2e   : > { %856 = vmatpush1.msra.mxu0 %v833_v4  ;;  %v837_v25 = vld [vmem:[%s7113_s1 + $0x80] sm:$0xff] }
  0x2f   : > { %857 = vmatprep.subr.mxu0 %v5877_v1  ;;  %v819_v26 = vld [vmem:[%s7114_s24] sm:$0xff] }
  0x30   : > { %858 = vmatpush1.msra.mxu0 %v832_v5  ;;  %v921_v28 = vld [vmem:[%s7115_s0] sm:$0x1]  ;;  %s7118_s0 = sld [smem:[#allocation15_spill]] }
  0x31   : > { %859 = vmatprep.subr.mxu0 %v5877_v1  ;;  %v929_v31 = vld [vmem:[%s7116_s2] sm:$0x1f] }
  0x32   : > { %860 = vmatpush1.msra.mxu0 %v831_v7  ;;  %v5452_v57 = vld [vmem:[%s7117_s19] ss:$0 sm:$0xff] }
  0x33   : > { %861 = vmatprep.subr.mxu0 %v5877_v1 }
  0x34   : > { %862 = vmatpush1.msra.mxu0 %v830_v8 }
  0x35   : > { %863 = vmatprep.subr.mxu0 %v5877_v1 }
  0x36   : > { %864 = vmatpush1.msra.mxu0 %v829_v9  ;;  %v5453_v59 = vld [vmem:[%s7118_s0] ss:$0 sm:$0xff] }
  0x37   : > { %865 = vmatprep.subr.mxu0 %v5877_v1 }
  0x38   : > { %866 = vmatpush1.msra.mxu0 %v828_v10 }
  0x39   : > { %867 = vmatprep.subr.mxu0 %v5877_v1 }
  0x3a   : > { %868 = vmatpush1.msra.mxu0 %v827_v11 }
  0x3b   : > { %869 = vmatprep.subr.mxu0 %v5877_v1 }
  0x3c   : > { %870 = vmatpush1.msra.mxu0 %v826_v12 }
  0x3d   : > { %871 = vmatprep.subr.mxu0 %v5877_v1 }
  0x3e   : > { %872 = vmatpush1.msra.mxu0 %v825_v13 }
  0x3f   : > { %873 = vmatprep.subr.mxu0 %v5877_v1 }
  0x40   : > { %874 = vmatpush1.msra.mxu0 %v824_v14 }
  0x41   : > { %875 = vmatprep.subr.mxu0 %v5877_v1 }
  0x42   : > { %876 = vmatpush1.msra.mxu0 %v823_v15 }
  0x43   : > { %877 = vmatprep.subr.mxu0 %v5877_v1 }
  0x44   : > { %878 = vmatpush1.msra.mxu0 %v822_v16 }
  0x45   : > { %879 = vmatprep.subr.mxu0 %v5877_v1 }
  0x46   : > { %880 = vmatpush1.msra.mxu0 %v821_v17 }
  0x47   : > { %897 = vmatprep.subr.mxu0 %v5877_v1 }
  0x48   : > { %898 = vmatpush2.msra.mxu0 %v844_v18 }
  0x49   : > { %899 = vmatprep.subr.mxu0 %v5877_v1 }
  0x4a   : > { %900 = vmatpush2.msra.mxu0 %v843_v19 }
  0x4b   : > { %901 = vmatprep.subr.mxu0 %v5877_v1 }
  0x4c   : > { %902 = vmatpush2.msra.mxu0 %v842_v20 }
  0x4d   : > { %903 = vmatprep.subr.mxu0 %v5877_v1 }
  0x4e   : > { %904 = vmatpush2.msra.mxu0 %v841_v21 }
  0x4f   : > { %905 = vmatprep.subr.mxu0 %v5877_v1 }
  0x50   : > { %906 = vmatpush2.msra.mxu0 %v840_v22 }
  0x51   : > { %907 = vmatprep.subr.mxu0 %v5877_v1 }
  0x52   : > { %908 = vmatpush2.msra.mxu0 %v839_v23 }
  0x53   : > { %909 = vmatprep.subr.mxu0 %v5877_v1 }
  0x54   : > { %910 = vmatpush2.msra.mxu0 %v838_v24 }
  0x55   : > { %911 = vmatprep.subr.mxu0 %v5877_v1 }
  0x56   : > { %912 = vmatpush2.msra.mxu0 %v837_v25 }
  0x57   : > { %914 = vmatmul.mubr.f32.vlgmr.msra.gmra.mxu0 %v819_v26 }
 0x117   : > { %v915_v27 = vpop.f32.mrf.mxu0 }
 0x118   : > { %v920_v29 = vcombine.high %v915_v27, %v915_v27  ;;  %v922_v30 = vrot.slane %v915_v27, 7 }
 0x119   : > { %v917_v32 = vpop.f32.mrf.mxu0 }
 0x11a   : > { %v923_v33 = vrot.slane %v920_v29, 7  ;;  %v927_v34 = vsel %vm926_vm1, %v921_v28, %v922_v30 }
 0x11b   : > { %v930_v35 = vadd.f32 %v929_v31, %v927_v34 }
 0x11c   : > { %v928_v36 = vsel %vm926_vm1, %v921_v28, %v923_v33 }
 0x11d   : > { %v935_v37 = vsel %vm934_vm2, %v930_v35, 0.0  ;;  %v931_v38 = vadd.f32 %v929_v31, %v928_v36 }
 0x11e   : > { %936 = vadd.xlane.f32.xlu0 %v935_v37 }
 0x11f   : > { %v938_v39 = vsel %vm934_vm2, %v931_v38, 0.0 }
 0x122   : > { %939 = vadd.xlane.f32.xlu0 %v938_v39 }
 0x1a7   : > { %v937_v40 = vpop.xlane.xlu0 %936 }
 0x1a8   : > { %v942_v41 = vmul.f32 0.03125, %v937_v40 }
 0x1aa   : > { %v944_v42 = vsub.f32 %v930_v35, %v942_v41 }
 0x1ab   : > { %v940_v43 = vpop.xlane.xlu0 %939 }
 0x1ac   : > { %v943_v44 = vmul.f32 0.03125, %v940_v43  ;;  %v946_v45 = vmul.f32 %v944_v42, %v944_v42 }
 0x1ae   : > { %v945_v46 = vsub.f32 %v931_v38, %v943_v44  ;;  %v948_v47 = vsel %vm934_vm2, %v946_v45, 0.0 }
 0x1af   : > { %949 = vadd.xlane.f32.xlu1 %v948_v47 }
 0x1b0   : > { %v947_v48 = vmul.f32 %v945_v46, %v945_v46 }
 0x1b2   : > { %v951_v49 = vsel %vm934_vm2, %v947_v48, 0.0 }
 0x1b3   : > { %952 = vadd.xlane.f32.xlu1 %v951_v49 }
 0x238   : > { %v950_v50 = vpop.xlane.xlu1 %949 }
 0x239   : > { %v954_v51 = vmul.f32 0.03125, %v950_v50 }
 0x23b   : > { %v956_v52 = vadd.f32 1e-05, %v954_v51 }
 0x23c   : > { %v953_v53 = vpop.xlane.xlu1 %952 }
 0x23d   : > { %5785 = vrsqrt.f32 %v956_v52  ;;  %v955_v54 = vmul.f32 0.03125, %v953_v53 }
 0x23f   : > { %v957_v55 = vadd.f32 1e-05, %v955_v54 }
 0x241   : > { %5787 = vrsqrt.f32 %v957_v55 }
 0x24a   : > { %v5786_v56 = vpop.eup %5785 }
 0x24b   : > { %v960_v58 = vmul.f32 %v5786_v56, %v944_v42 }
 0x24d   : > { %v968_v60 = vmul.f32 %v5452_v57, %v960_v58 }
 0x24e   : > { %v5788_v61 = vpop.eup %5787 }
 0x24f   : > { %v976_v62 = vadd.f32 %v5453_v59, %v968_v60  ;;  %v961_v63 = vmul.f32 %v5788_v61, %v945_v46 }
 0x251   : > { %978 = vst.msk [vmem:[#allocation2] sm:$0x1f] %vm934_vm2, %v976_v62  ;;  %v969_v0 = vmul.f32 %v5452_v57, %v961_v63 }
 0x253   : > { %v977_v1 = vadd.f32 %v5453_v59, %v969_v0 }
 0x255   : > { %979 = vst.msk [vmem:[#allocation2 + $0x8] sm:$0x1f] %vm934_vm2, %v977_v1 }
 0x256 PF: > { %v988_v3 = vlaneseq  ;;  %v5878_v4 = vmov 1966171168   ;;  %vm1140_vm3 = vcmask 261120   ;;  %vm1144_vm4 = vcmask 254976   ;;  %s7122_s2 = scalar_lea.vmem %s7072_s6, %s6016_s26  ;;  %s7123_s19 = scalar_lea.vmem %s7073_s7, %s6016_s26 }
 0x257   : > { %v986_v5 = vunpack.c.l.s4 %v5878_v4  ;;  %s7124_s4 = scalar_lea.vmem %s7075_s9, %s6016_s26  ;;  %s5879_s0 = smov 112   ;;  %vm5884_vm5 = vmmov 0   ;;  %vm2392_vm6 = vcmask 64512   ;;  %vm3001_vm7 = vcmask 36864  }
 0x258   : > { %v980_v2 = vld [vmem:[#allocation2] sm:$0x1f]  ;;  %v6193_v7 = vshrl.u32 %v988_v3, 7  ;;  %s5880_s22 = smov 120   ;;  %s5881_s30 = smov 104   ;;  %vm3094_vm8 = vcmask 1044480  }
 0x259   : > { %v984_v8 = vcombine.high %v980_v2, %v980_v2  ;;  %v987_v9 = vunpack.c.0.s8 %v986_v5  ;;  %s5887_s20 = smov 64   ;;  %vm3090_vm9 = vcmask 39936   ;;  %s5888_s3 = smov 16   ;;  %vm3942_vm10 = vcmask 130048  }
 0x25a   : > { %v6249_v44 = vsub.s32 0, %v6193_v7  ;;  %v6252_v45 = vsub.s32 1, %v6193_v7  ;;  %v6255_v46 = vsub.s32 2, %v6193_v7  ;;  %v6258_v47 = vsub.s32 3, %v6193_v7  ;;  %p5510_p5 = scmp.ne.s32.totalorder %s6010_s25, 1 }
 0x25b   : > { %v6196_v11 = vsub.s32 %v987_v9, %v6193_v7  ;;  %v6261_v49 = vsub.s32 4, %v6193_v7  ;;  %v6264_v50 = vsub.s32 5, %v6193_v7  ;;  %v6267_v51 = vsub.s32 6, %v6193_v7 }
 0x25c   : > { %v981_v6 = vld [vmem:[#allocation2 + $0x8] sm:$0x1f]  ;;  %v6270_v52 = vsub.s32 7, %v6193_v7  ;;  %vm3945_vm11 = vcmask 195584   ;;  %vm5046_vm12 = vcmask 258048  }
 0x25d   : > { %v1023_v10 = vcombine.high %v981_v6, %v981_v6  ;;  %v991_v12 = vrot.slane %v980_v2, %v6196_v11  ;;  %v998_v13 = vrot.slane %v984_v8, %v6196_v11  ;;  %v1030_v14 = vrot.slane %v981_v6, %v6196_v11  ;;  %7119 = vst [vmem:[#allocation7_spill] sm:$0xff] %v6264_v50 }
 0x25e   : > { %7120 = vst [vmem:[#allocation8_spill] sm:$0xff] %v6267_v51  ;;  %7121 = vst [vmem:[#allocation9_spill] sm:$0xff] %v6270_v52 }
 0x25f   : > { %v1037_v15 = vrot.slane %v1023_v10, %v6196_v11  ;;  %v999_v16 = vcombine.high %v991_v12, %v991_v12  ;;  %v6203_v17 = vrot.slane %v991_v12, %v6196_v11  ;;  %v6206_v18 = vrot.slane %v998_v13, %v6196_v11 }
 0x260   : > { %v1038_v19 = vcombine.high %v1030_v14, %v1030_v14  ;;  %v6209_v20 = vrot.slane %v1030_v14, %v6196_v11 }
 0x261   : > { %v6212_v21 = vrot.slane %v999_v16, %v6196_v11  ;;  %v6218_v23 = vrot.slane %v1037_v15, %v6196_v11  ;;  %v6274_v54 = vcombine.high %v6203_v17, %v6203_v17 }
 0x262   : > { %v6215_v22 = vrot.slane %v1038_v19, %v6196_v11  ;;  %v6222_v24 = vcombine.high %v6209_v20, %v6209_v20  ;;  %v1076_v25 = vcombine.low %v6206_v18, %v6209_v20 }
 0x263   : > { %v1074_v26 = vcombine.low %v6203_v17, %v6212_v21  ;;  %v5454_v27 = vcombine.high %v6203_v17, %v6212_v21  ;;  %v6278_v55 = vcombine.high %v6212_v21, %v6212_v21 }
 0x264   : > { %v6232_v28 = vcombine.high %v6215_v22, %v6215_v22  ;;  %v1077_v29 = vcombine.low %v6215_v22, %v6222_v24  ;;  %v1098_v30 = vrot.slane %v1076_v25, %v6196_v11 }
 0x265   : > { %v1084_v31 = vrot.slane %v1074_v26, %v6196_v11  ;;  %v1091_v32 = vrot.slane %v5454_v27, %v6196_v11 }
 0x266   : > { %v1123_v33 = vcombine.low %v6232_v28, %v6218_v23  ;;  %v1105_v34 = vrot.slane %v1077_v29, %v6196_v11 }
 0x267   : > { %v1106_v35 = vcombine.low %v1084_v31, %v1091_v32 }
 0x268   : > { %v1107_v36 = vcombine.low %v1098_v30, %v1105_v34  ;;  %v1130_v37 = vrot.slane %v1123_v33, %v6196_v11 }
 0x269   : > { %v1114_v38 = vrot.slane %v1106_v35, %v6196_v11 }
 0x26a   : > { %v1121_v39 = vrot.slane %v1107_v36, %v6196_v11  ;;  %v1137_v41 = vrot.slane %v1130_v37, %v6196_v11 }
 0x26c   : > { %v1122_v40 = vcombine.low %v1114_v38, %v1121_v39  ;;  %v1145_v43 = vsel %vm1144_vm4, %v1137_v41, 0.0 }
 0x26e   : > { %v1141_v42 = vsel %vm1140_vm3, %v1122_v40, 0.0 }
 0x26f   : > { %1142 = vadd.xlane.f32.xlu0 %v1141_v42 }
 0x273   : > { %1146 = vadd.xlane.f32.xlu0 %v1145_v43 }
 0x2f8   : > { %v1143_v48 = vpop.xlane.xlu0 %1142 }
 0x2f9   : > { %v1149_v53 = vmul.f32 0.03125, %v1143_v48 }
 0x2fb   : > { %v1156_v56 = vrot.slane %v1149_v53, %v6249_v44  ;;  %v1160_v57 = vrot.slane %v1149_v53, %v6252_v45  ;;  %v1164_v58 = vrot.slane %v1149_v53, %v6255_v46  ;;  %v1168_v59 = vrot.slane %v1149_v53, %v6258_v47 }
 0x2fc   : > { %v1147_v60 = vpop.xlane.xlu0 %1146  ;;  %v1172_v61 = vrot.slane %v1149_v53, %v6261_v49  ;;  %v1176_v62 = vrot.slane %v1149_v53, %v6264_v50  ;;  %v1180_v63 = vrot.slane %v1149_v53, %v6267_v51  ;;  %v1184_v0 = vrot.slane %v1149_v53, %v6270_v52 }
 0x2fd   : > { %v1150_v1 = vmul.f32 0.03125, %v1147_v60  ;;  %v6289_v2 = vsub.f32 %v6203_v17, %v1156_v56  ;;  %v6292_v3 = vsub.f32 %v6212_v21, %v1160_v57  ;;  %v6295_v4 = vsub.f32 %v6274_v54, %v1164_v58 }
 0x2fe   : > { %v6298_v5 = vsub.f32 %v6278_v55, %v1168_v59  ;;  %v6301_v6 = vsub.f32 %v6206_v18, %v1172_v61  ;;  %v6304_v8 = vsub.f32 %v6209_v20, %v1176_v62  ;;  %v6307_v9 = vsub.f32 %v6215_v22, %v1180_v63  ;;  %v1520_v62 = vld [vmem:[%s6034_s27 + $0x18] sm:$0xff]  ;;  %v1519_v63 = vld [vmem:[%s6034_s27 + $0x10] sm:$0xff] }
 0x2ff   : > { %v1188_v10 = vrot.slane %v1150_v1, %v6249_v44  ;;  %v1192_v12 = vrot.slane %v1150_v1, %v6252_v45  ;;  %v6312_v13 = vsub.f32 %v6222_v24, %v1184_v0  ;;  %v1213_v14 = vmul.f32 %v6289_v2, %v6289_v2  ;;  %5595 = vmatprep.subr.mxu1 %v1520_v62  ;;  %v1518_v0 = vld [vmem:[%s6034_s27 + $0x8] sm:$0xff]  ;;  %v1517_v1 = vld [vmem:[%s6034_s27] sm:$0xff] }
 0x300   : > { %v1214_v15 = vmul.f32 %v6292_v3, %v6292_v3  ;;  %v1215_v16 = vmul.f32 %v6295_v4, %v6295_v4  ;;  %v1216_v19 = vmul.f32 %v6298_v5, %v6298_v5  ;;  %v1217_v25 = vmul.f32 %v6301_v6, %v6301_v6  ;;  %5596 = vmatpush3.msra.mxu1 %v1520_v62 }
 0x301   : > { %v6325_v26 = vsub.f32 %v6232_v28, %v1188_v10  ;;  %v6328_v27 = vsub.f32 %v6218_v23, %v1192_v12  ;;  %v1218_v29 = vmul.f32 %v6304_v8, %v6304_v8  ;;  %v1219_v30 = vmul.f32 %v6307_v9, %v6307_v9  ;;  %5597 = vmatprep.subr.mxu1 %v1519_v63  ;;  %v5455_v10 = vld [vmem:[%s7122_s2] ss:$0 sm:$0xff]  ;;  %s5882_s2 = smov 96  }
 0x302   : > { %v1220_v31 = vmul.f32 %v6312_v13, %v6312_v13  ;;  %v1233_v32 = vcombine.low %v1213_v14, %v1214_v15  ;;  %v1234_v33 = vcombine.low %v1215_v16, %v1216_v19  ;;  %5598 = vmatpush3.msra.mxu1 %v1519_v63  ;;  %v5456_v12 = vld [vmem:[%s7123_s19] ss:$0 sm:$0xff]  ;;  %v1378_v16 = vcombine.high %v5455_v10, %v5455_v10  ;;  %s5889_s19 = smov 8  }
 0x303   : > { %v1221_v34 = vmul.f32 %v6325_v26, %v6325_v26  ;;  %v1222_v35 = vmul.f32 %v6328_v27, %v6328_v27  ;;  %v1235_v36 = vcombine.low %v1217_v25, %v1218_v29  ;;  %5599 = vmatprep.subr.mxu1 %v1518_v0  ;;  %v1450_v19 = vcombine.high %v5456_v12, %v5456_v12 }
 0x304   : > { %v1236_v37 = vcombine.low %v1219_v30, %v1220_v31  ;;  %v1243_v38 = vrot.slane %v1233_v32, %v6196_v11  ;;  %v1250_v39 = vrot.slane %v1234_v33, %v6196_v11  ;;  %5600 = vmatpush3.msra.mxu1 %v1518_v0  ;;  %v1385_v31 = vrot.slane %v5455_v10, %v6196_v11 }
 0x305   : > { %v1257_v40 = vrot.slane %v1235_v36, %v6196_v11  ;;  %v1282_v41 = vcombine.low %v1221_v34, %v1222_v35  ;;  %5601 = vmatprep.subr.mxu1 %v1517_v1  ;;  %v1392_v32 = vrot.slane %v1378_v16, %v6196_v11  ;;  %v1457_v33 = vrot.slane %v5456_v12, %v6196_v11 }
 0x306   : > { %v1264_v42 = vrot.slane %v1236_v37, %v6196_v11  ;;  %v1265_v43 = vcombine.low %v1243_v38, %v1250_v39  ;;  %5602 = vmatpush3.msra.mxu1 %v1517_v1  ;;  %v1464_v34 = vrot.slane %v1450_v19, %v6196_v11  ;;  %v1393_v36 = vcombine.high %v1385_v31, %v1385_v31 }
 0x307   : > { %v1289_v56 = vrot.slane %v1282_v41, %v6196_v11  ;;  %v1394_v37 = vcombine.high %v1392_v32, %v1392_v32  ;;  %v1465_v38 = vcombine.high %v1457_v33, %v1457_v33  ;;  %v1408_v41 = vrot.slane %v1392_v32, %v6196_v11 }
 0x308   : > { %v1266_v48 = vcombine.low %v1257_v40, %v1264_v42  ;;  %v1273_v53 = vrot.slane %v1265_v43, %v6196_v11  ;;  %v1466_v39 = vcombine.high %v1464_v34, %v1464_v34  ;;  %v1401_v40 = vrot.slane %v1385_v31, %v6196_v11 }
 0x309   : > { %v1296_v59 = vrot.slane %v1289_v56, %v6196_v11  ;;  %v1415_v42 = vrot.slane %v1393_v36, %v6196_v11  ;;  %v1422_v43 = vrot.slane %v1394_v37, %v6196_v11  ;;  %v1487_v56 = vrot.slane %v1465_v38, %v6196_v11 }
 0x30a   : > { %v1280_v57 = vrot.slane %v1266_v48, %v6196_v11  ;;  %v1473_v48 = vrot.slane %v1457_v33, %v6196_v11 }
 0x30b   : > { %v1302_v61 = vsel %vm1144_vm4, %v1296_v59, 0.0  ;;  %v1424_v59 = vcombine.high %v1408_v41, %v1408_v41  ;;  %v1497_v1 = vcombine.high %v1487_v56, %v1487_v56 }
 0x30c   : > { %v1281_v58 = vcombine.low %v1273_v53, %v1280_v57  ;;  %v1480_v53 = vrot.slane %v1464_v34, %v6196_v11  ;;  %v1494_v57 = vrot.slane %v1466_v39, %v6196_v11  ;;  %v1495_v63 = vcombine.high %v1473_v48, %v1473_v48 }
 0x30e   : > { %v1299_v60 = vsel %vm1140_vm3, %v1281_v58, 0.0  ;;  %v1423_v58 = vcombine.high %v1401_v40, %v1401_v40  ;;  %v1496_v0 = vcombine.high %v1480_v53, %v1480_v53  ;;  %v1498_v10 = vcombine.high %v1494_v57, %v1494_v57 }
 0x30f   : > { %1300 = vadd.xlane.f32.xlu1 %v1299_v60  ;;  %v1425_v60 = vcombine.high %v1415_v42, %v1415_v42 }
 0x313   : > { %1303 = vadd.xlane.f32.xlu1 %v1302_v61  ;;  %v1426_v61 = vcombine.high %v1422_v43, %v1422_v43 }
 0x398   : > { %v1301_v14 = vpop.xlane.xlu1 %1300 }
 0x399   : > { %v1305_v15 = vmul.f32 0.03125, %v1301_v14 }
 0x39b   : > { %v1307_v25 = vadd.f32 1e-05, %v1305_v15 }
 0x39c   : > { %v1304_v29 = vpop.xlane.xlu1 %1303 }
 0x39d   : > { %5791 = vrsqrt.f32 %v1307_v25  ;;  %v1306_v30 = vmul.f32 0.03125, %v1304_v29 }
 0x39f   : > { %v1308_v35 = vadd.f32 1e-05, %v1306_v30 }
 0x3a1   : > { %5793 = vrsqrt.f32 %v1308_v35 }
 0x3aa   : > { %v5792_v62 = vpop.eup %5791 }
 0x3ab   : > { %v1316_v12 = vrot.slane %v5792_v62, %v6249_v44  ;;  %v1320_v14 = vrot.slane %v5792_v62, %v6252_v45  ;;  %v1324_v15 = vrot.slane %v5792_v62, %v6255_v46  ;;  %v1328_v16 = vrot.slane %v5792_v62, %v6258_v47 }
 0x3ac   : > { %v1332_v19 = vrot.slane %v5792_v62, %v6261_v49  ;;  %v1336_v25 = vrot.slane %v5792_v62, %v6264_v50  ;;  %v1340_v29 = vrot.slane %v5792_v62, %v6267_v51  ;;  %v1344_v30 = vrot.slane %v5792_v62, %v6270_v52 }
 0x3ad   : > { %v1363_v31 = vmul.f32 %v1316_v12, %v6289_v2  ;;  %v1364_v32 = vmul.f32 %v1320_v14, %v6292_v3  ;;  %v1365_v33 = vmul.f32 %v1324_v15, %v6295_v4  ;;  %v1366_v34 = vmul.f32 %v1328_v16, %v6298_v5 }
 0x3ae   : > { %v5794_v35 = vpop.eup %5793  ;;  %v1367_v36 = vmul.f32 %v1332_v19, %v6301_v6  ;;  %v1368_v37 = vmul.f32 %v1336_v25, %v6304_v8  ;;  %v1369_v38 = vmul.f32 %v1340_v29, %v6307_v9  ;;  %v1370_v39 = vmul.f32 %v1344_v30, %v6312_v13 }
 0x3af   : > { %v1348_v51 = vrot.slane %v5794_v35, %v6249_v44  ;;  %v1352_v62 = vrot.slane %v5794_v35, %v6252_v45  ;;  %v1435_v2 = vmul.f32 %v1401_v40, %v1363_v31  ;;  %v1436_v12 = vmul.f32 %v1415_v42, %v1364_v32 }
 0x3b0   : > { %v1437_v3 = vmul.f32 %v1423_v58, %v1365_v33  ;;  %v1438_v14 = vmul.f32 %v1425_v60, %v1366_v34  ;;  %v1439_v4 = vmul.f32 %v1408_v41, %v1367_v36  ;;  %v1440_v15 = vmul.f32 %v1422_v43, %v1368_v37 }
 0x3b1   : > { %v1441_v5 = vmul.f32 %v1424_v59, %v1369_v38  ;;  %v1442_v16 = vmul.f32 %v1426_v61, %v1370_v39  ;;  %v1507_v52 = vadd.f32 %v1473_v48, %v1435_v2  ;;  %v1508_v6 = vadd.f32 %v1487_v56, %v1436_v12 }
 0x3b2   : > { %v1509_v19 = vadd.f32 %v1495_v63, %v1437_v3  ;;  %v1510_v8 = vadd.f32 %v1497_v1, %v1438_v14  ;;  %v1511_v25 = vadd.f32 %v1480_v53, %v1439_v4  ;;  %v1512_v9 = vadd.f32 %v1494_v57, %v1440_v15 }
 0x3b3   : > { %v1513_v29 = vadd.f32 %v1496_v0, %v1441_v5  ;;  %v1514_v13 = vadd.f32 %v1498_v10, %v1442_v16  ;;  %v1538_v30 = vcombine.low %v1507_v52, %v1508_v6  ;;  %v1371_v50 = vmul.f32 %v1348_v51, %v6325_v26 }
 0x3b4   : > { %v1539_v35 = vcombine.low %v1509_v19, %v1510_v8  ;;  %v1540_v31 = vcombine.low %v1511_v25, %v1512_v9  ;;  %v1372_v58 = vmul.f32 %v1352_v62, %v6328_v27  ;;  %v5883_v39 = vmov 0.0  }
 0x3b5   : > { %v1541_v60 = vcombine.low %v1513_v29, %v1514_v13  ;;  %v1548_v41 = vrot.slane %v1538_v30, %v6196_v11  ;;  %v1443_v43 = vmul.f32 %v1401_v40, %v1371_v50  ;;  %5606 = vmatprep.subr.mxu1 %v5883_v39  ;;  %5616 = vmatprep.subr.mxu0 %v5883_v39  ;;  %v5885_v15 = vmov 1983009808  }
 0x3b6   : > { %v1555_v59 = vrot.slane %v1539_v35, %v6196_v11  ;;  %v1562_v61 = vrot.slane %v1540_v31, %v6196_v11  ;;  %v1444_v53 = vmul.f32 %v1415_v42, %v1372_v58  ;;  %5618 = vmatprep.mubr.msk.f32.mxu0 %vm5884_vm5, %v5883_v39  ;;  %v1706_v5 = vunpack.c.l.s4 %v5885_v15 }
 0x3b7   : > { %v1569_v57 = vrot.slane %v1541_v60, %v6196_v11  ;;  %v1515_v63 = vadd.f32 %v1473_v48, %v1443_v43  ;;  %v5457_v48 = vld [vmem:[%s7124_s4] ss:$0 sm:$0xff]  ;;  %v5886_v6 = vmov 1934713408   ;;  %s7125_s4 = scalar_lea.vmem %s7077_s11, %s6016_s26 }
 0x3b8   : > { %v1570_v52 = vcombine.low %v1548_v41, %v1555_v59  ;;  %v1516_v0 = vadd.f32 %v1487_v56, %v1444_v53  ;;  %v1738_v19 = vunpack.c.l.s4 %v5886_v6  ;;  %v1707_v8 = vunpack.c.0.s8 %v1706_v5 }
 0x3b9   : > { %v1571_v51 = vcombine.low %v1562_v61, %v1569_v57 }
 0x3ba   : > { %v1578_v26 = vrot.slane %v1570_v52, %v6196_v11  ;;  %v1587_v1 = vcombine.low %v1515_v63, %v1516_v0  ;;  %v1739_v30 = vunpack.c.0.s8 %v1738_v19  ;;  %v6467_v35 = vsub.s32 %v1707_v8, %v6193_v7 }
 0x3bb   : > { %v1585_v27 = vrot.slane %v1571_v51, %v6196_v11 }
 0x3bc   : > { %v1594_v10 = vrot.slane %v1587_v1, %v6196_v11  ;;  %v6472_v52 = vsub.s32 %v1739_v30, %v6193_v7 }
 0x3bd   : > { %v1586_v50 = vcombine.low %v1578_v26, %v1585_v27 }
 0x3be   : > { %v1601_v40 = vrot.slane %v1594_v10, %v6196_v11 }
 0x3bf   : > { %5603 = vmatprep.mubr.msk.f32.mxu1 %vm1140_vm3, %v1586_v50 }
 0x3c0   : > { %5604 = vmatmul.mubr.msk.f32.vlgmr.msra.gmra.mxu1 %vm1140_vm3, %v1601_v40 }
 0x3c1   : > { %5608 = vmatprep.mubr.msk.f32.mxu1 %vm5884_vm5, %v5883_v39 }
 0x480   : > { %v5605_v42 = vpop.f32.mrf.mxu1 }
 0x481   : > { %v6417_v33 = vadd.f32 %v5605_v42, %v5457_v48 }
 0x482   : > { %v1672_v56 = vpop.f32.mrf.mxu1 }
 0x483   : > { %v6411_v32 = vadd.f32 %v5457_v48, %v1672_v56  ;;  %v6454_v3 = vmul.f32 0.35355338, %v6417_v33 }
 0x485   : > { %1918 = vrot.lane.b32.xlu1 %v6411_v32, %s5879_s0  ;;  %1914 = vrot.lane.b32.xlu0 %v6411_v32, %s5880_s22  ;;  %v1681_v34 = vmul.f32 0.35355338, %v6411_v32 }
 0x489   : > { %1922 = vrot.lane.b32.xlu1 %v6411_v32, %s5881_s30  ;;  %1920 = vrot.lane.b32.xlu0 %v6417_v33, %s5879_s0 }
 0x48d   : > { %1916 = vrot.lane.b32.xlu1 %v6417_v33, %s5880_s22  ;;  %1926 = vrot.lane.b32.xlu0 %v6411_v32, %s5882_s2 }
 0x491   : > { %1924 = vrot.lane.b32.xlu1 %v6417_v33, %s5881_s30  ;;  %1685 = vrot.lane.b32.xlu0 %v1681_v34, %s5880_s22 }
 0x495   : > { %1691 = vrot.lane.b32.xlu1 %v1681_v34, %s5879_s0 }
 0x4f7   : > { %v6431_v36 = vpop.permute.xlu1 %1918  ;;  %v6433_v37 = vpop.permute.xlu0 %1914 }
 0x4f8   : > { %1930 = vrot.lane.b32.xlu1 %v6433_v37, %s5882_s2  ;;  %1934 = vrot.lane.b32.xlu0 %v6431_v36, %s5882_s2 }
 0x4fb   : > { %v6437_v38 = vpop.permute.xlu1 %1922  ;;  %v6447_v2 = vpop.permute.xlu0 %1920 }
 0x4fc   : > { %1938 = vrot.lane.b32.xlu1 %v6437_v38, %s5882_s2  ;;  %1697 = vrot.lane.b32.xlu0 %v1681_v34, %s5881_s30 }
 0x4ff   : > { %v6443_v62 = vpop.permute.xlu1 %1916  ;;  %v1927_v14 = vpop.permute.xlu0 %1926 }
 0x500   : > { %1928 = vrot.lane.b32.xlu1 %v6417_v33, %s5882_s2  ;;  %1932 = vrot.lane.b32.xlu0 %v6443_v62, %s5882_s2 }
 0x503   : > { %v6449_v12 = vpop.permute.xlu1 %1924  ;;  %v1686_v4 = vpop.permute.xlu0 %1685 }
 0x504   : > { %1936 = vrot.lane.b32.xlu1 %v6447_v2, %s5882_s2  ;;  %1940 = vrot.lane.b32.xlu0 %v6449_v12, %s5882_s2 }
 0x507   : > { %v1692_v16 = vpop.permute.xlu1 %1691 }
 0x508   : > { %1687 = vrot.lane.b32.xlu1 %v6454_v3, %s5880_s22  ;;  %1693 = vrot.lane.b32.xlu0 %v6454_v3, %s5879_s0  ;;  %v1703_v31 = vcombine.low %v1681_v34, %v1692_v16  ;;  %v1704_v58 = vcombine.high %v1681_v34, %v1692_v16  ;;  %s7130_s22 = sld [smem:[#allocation18_spill]] (!%p5510_p5) }
 0x50a   : > { %v1711_v27 = vrot.slane %v1703_v31, %v6467_v35  ;;  %v6482_v10 = vrot.slane %v1704_v58, %v6467_v35 }
 0x50c   : > { %1699 = vrot.lane.b32.xlu1 %v6454_v3, %s5881_s30 }
 0x56a   : > { %v1931_v25 = vpop.permute.xlu1 %1930  ;;  %v1935_v9 = vpop.permute.xlu0 %1934 }
 0x56b   : > { %v1950_v29 = vcombine.low %v1927_v14, %v1935_v9  ;;  %v1951_v13 = vcombine.high %v1927_v14, %v1935_v9 }
 0x56d   : > { %v1958_v57 = vrot.slane %v1950_v29, %v6467_v35  ;;  %v1965_v63 = vrot.slane %v1951_v13, %v6467_v35 }
 0x56e   : > { %v1939_v60 = vpop.permute.xlu1 %1938  ;;  %v1698_v41 = vpop.permute.xlu0 %1697 }
 0x56f   : > { %v1966_v43 = vcombine.low %v1931_v25, %v1939_v60  ;;  %v1967_v59 = vcombine.high %v1931_v25, %v1939_v60  ;;  %v1719_v61 = vcombine.low %v1686_v4, %v1698_v41  ;;  %v1720_v53 = vcombine.high %v1686_v4, %v1698_v41 }
 0x571   : > { %v1974_v0 = vrot.slane %v1966_v43, %v6467_v35  ;;  %v1981_v51 = vrot.slane %v1967_v59, %v6467_v35  ;;  %v1727_v26 = vrot.slane %v1719_v61, %v6467_v35  ;;  %v6478_v1 = vrot.slane %v1720_v53, %v6467_v35 }
 0x572   : > { %v1929_v50 = vpop.permute.xlu1 %1928  ;;  %v1933_v40 = vpop.permute.xlu0 %1932 }
 0x573   : > { %v1982_v42 = vcombine.low %v1958_v57, %v1974_v0  ;;  %v1983_v48 = vcombine.high %v1958_v57, %v1974_v0  ;;  %v1998_v7 = vcombine.low %v1965_v63, %v1981_v51  ;;  %v1735_v56 = vcombine.low %v1711_v27, %v1727_v26 }
 0x574   : > { %v1736_v34 = vcombine.high %v1711_v27, %v1727_v26  ;;  %v1751_v14 = vcombine.low %v6482_v10, %v6478_v1  ;;  %v1999_v16 = vcombine.high %v1965_v63, %v1981_v51  ;;  %v1752_v43 = vcombine.high %v6482_v10, %v6478_v1 }
 0x575   : > { %v1990_v4 = vrot.slane %v1982_v42, %v6472_v52  ;;  %v1997_v15 = vrot.slane %v1983_v48, %v6472_v52  ;;  %v2006_v5 = vrot.slane %v1998_v7, %v6472_v52  ;;  %v1743_v6 = vrot.slane %v1735_v56, %v6472_v52 }
 0x576   : > { %v1750_v19 = vrot.slane %v1736_v34, %v6472_v52  ;;  %v6492_v8 = vrot.slane %v1751_v14, %v6472_v52  ;;  %v1937_v25 = vpop.permute.xlu1 %1936  ;;  %v1941_v9 = vpop.permute.xlu0 %1940  ;;  %v2013_v59 = vrot.slane %v1999_v16, %v6472_v52 }
 0x577   : > { %v2042_v29 = vcombine.low %v1990_v4, %v1997_v15  ;;  %v5462_v13 = vcombine.high %v1990_v4, %v1997_v15  ;;  %v2064_v30 = vrot.slane %v2006_v5, %v6467_v35  ;;  %v2018_v27 = vcombine.low %v1929_v50, %v1937_v25 }
 0x578   : > { %v1795_v31 = vcombine.low %v1743_v6, %v1750_v19  ;;  %v5460_v58 = vcombine.high %v1743_v6, %v1750_v19  ;;  %v1817_v57 = vrot.slane %v6492_v8, %v6467_v35  ;;  %v2026_v42 = vcombine.low %v1933_v40, %v1941_v9 }
 0x579   : > { %v2049_v60 = vrot.slane %v2042_v29, %v6467_v35  ;;  %v2057_v41 = vrot.slane %v5462_v13, %v6467_v35  ;;  %v2088_v26 = vrot.slane %v2064_v30, %v6472_v52  ;;  %v2081_v1 = vcombine.high %v2064_v30, %v5883_v39 }
 0x57a   : > { %v1802_v61 = vrot.slane %v1795_v31, %v6467_v35  ;;  %v1810_v53 = vrot.slane %v5460_v58, %v6467_v35  ;;  %v1688_v63 = vpop.permute.xlu1 %1687  ;;  %v1694_v0 = vpop.permute.xlu0 %1693  ;;  %v2025_v56 = vrot.slane %v2018_v27, %v6467_v35  ;;  %v2033_v34 = vrot.slane %v2026_v42, %v6467_v35 }
 0x57b   : > { %v2065_v51 = vcombine.low %v2049_v60, %v2057_v41  ;;  %v2066_v7 = vcombine.high %v2049_v60, %v2057_v41  ;;  %v1771_v14 = vcombine.low %v6454_v3, %v1694_v0  ;;  %v2095_v6 = vrot.slane %v2081_v1, %v6472_v52 }
 0x57c   : > { %v1818_v48 = vcombine.low %v1802_v61, %v1810_v53  ;;  %v1819_v10 = vcombine.high %v1802_v61, %v1810_v53  ;;  %v2034_v19 = vcombine.low %v2025_v56, %v2033_v34  ;;  %v1834_v29 = vcombine.high %v1817_v57, %v5883_v39 }
 0x57d   : > { %v2073_v4 = vrot.slane %v2065_v51, %v6472_v52  ;;  %v2080_v16 = vrot.slane %v2066_v7, %v6472_v52  ;;  %v5463_v13 = vcombine.high %v2006_v5, %v2013_v59  ;;  %v1841_v30 = vrot.slane %v1817_v57, %v6472_v52 }
 0x57e   : > { %v1700_v15 = vpop.permute.xlu1 %1699  ;;  %v1826_v50 = vrot.slane %v1818_v48, %v6472_v52  ;;  %v1833_v40 = vrot.slane %v1819_v10, %v6472_v52  ;;  %v2041_v31 = vrot.slane %v2034_v19, %v6472_v52  ;;  %v1778_v58 = vrot.slane %v1771_v14, %v6467_v35 }
 0x57f   : > { %v1779_v25 = vcombine.low %v1688_v63, %v1700_v15  ;;  %v2096_v9 = vcombine.low %v2073_v4, %v2088_v26  ;;  %v2098_v3 = vcombine.low %v2080_v16, %v2095_v6  ;;  %v1848_v41 = vrot.slane %v1834_v29, %v6472_v52 }
 0x580   : > { %v1766_v61 = vrot.slane %v1752_v43, %v6472_v52  ;;  %v1849_v53 = vcombine.low %v1826_v50, %v1841_v30  ;;  %v2097_v5 = vcombine.high %v2073_v4, %v2088_v26  ;;  %v2108_v57 = vcombine.low %v2013_v59, %v2041_v31 }
 0x581   : > { %v1786_v60 = vrot.slane %v1779_v25, %v6467_v35  ;;  %5607 = vmatpush3.xpose.msk.msra.mxu1 %vm2392_vm6, %v2096_v9  ;;  %5617 = vmatpush3.xpose.msk.msra.mxu0 %vm2392_vm6, %v2098_v3  ;;  %v2116_v63 = vcombine.high %v2041_v31, %v5883_v39  ;;  %v1851_v51 = vcombine.low %v1833_v40, %v1848_v41 }
 0x582   : > { %5611 = vmatprep.subr.mxu1 %v5883_v39  ;;  %5626 = vmatprep.subr.mxu0 %v5883_v39  ;;  %v2107_v27 = vrot.slane %v5463_v13, %v6467_v35  ;;  %v2115_v42 = vrot.slane %v2108_v57, %v6467_v35  ;;  %v5461_v59 = vcombine.high %v6492_v8, %v1766_v61 }
 0x583   : > { %v1787_v0 = vcombine.low %v1778_v58, %v1786_v60  ;;  %v2123_v43 = vrot.slane %v2116_v63, %v6467_v35  ;;  %v1850_v26 = vcombine.high %v1826_v50, %v1841_v30  ;;  %v2099_v1 = vcombine.high %v2080_v16, %v2095_v6 }
 0x584   : > { %5609 = vmatmul.mubr.msk.f32.vlgmr.msra.gmra.mxu1 %vm2392_vm6, %v1849_v53  ;;  %5619 = vmatmul.mubr.msk.f32.vlgmr.msra.gmra.mxu0 %vm2392_vm6, %v1851_v51  ;;  %v2124_v7 = vcombine.low %v2107_v27, %v2115_v42  ;;  %v2125_v10 = vcombine.high %v2107_v27, %v2115_v42  ;;  %v1860_v15 = vrot.slane %v5461_v59, %v6467_v35 }
 0x585   : > { %v1794_v48 = vrot.slane %v1787_v0, %v6472_v52  ;;  %5612 = vmatpush3.xpose.msk.msra.mxu1 %vm2392_vm6, %v2097_v5  ;;  %5613 = vmatprep.mubr.msk.f32.mxu1 %vm5884_vm5, %v5883_v39  ;;  %v2140_v14 = vcombine.high %v2123_v43, %v5883_v39  ;;  %v2147_v8 = vrot.slane %v2123_v43, %v6472_v52 }
 0x586   : > { %5621 = vmatprep.subr.mxu1 %v5883_v39  ;;  %5628 = vmatprep.mubr.msk.f32.mxu0 %vm5884_vm5, %v5883_v39  ;;  %v2132_v4 = vrot.slane %v2124_v7, %v6472_v52  ;;  %v1852_v50 = vcombine.high %v1833_v40, %v1848_v41  ;;  %v2139_v30 = vrot.slane %v2125_v10, %v6472_v52 }
 0x587   : > { %v1861_v56 = vcombine.low %v1766_v61, %v1794_v48  ;;  %v1869_v34 = vcombine.high %v1794_v48, %v5883_v39  ;;  %v2154_v3 = vrot.slane %v2140_v14, %v6472_v52 }
 0x588   : > { %5614 = vmatmul.mubr.msk.f32.vlgmr.msra.gmra.mxu1 %vm2392_vm6, %v1850_v26  ;;  %v2155_v19 = vcombine.low %v2132_v4, %v2147_v8  ;;  %v2156_v25 = vcombine.high %v2132_v4, %v2147_v8 }
 0x589   : > { %5622 = vmatpush3.xpose.msk.msra.mxu1 %vm2392_vm6, %v2099_v1  ;;  %5623 = vmatprep.mubr.msk.f32.mxu1 %vm5884_vm5, %v5883_v39  ;;  %v1868_v16 = vrot.slane %v1861_v56, %v6467_v35  ;;  %v1876_v6 = vrot.slane %v1869_v34, %v6467_v35  ;;  %v2157_v53 = vcombine.low %v2139_v30, %v2154_v3 }
 0x58a   : > { %5631 = vmatprep.subr.mxu1 %v5883_v39  ;;  %5627 = vmatpush3.xpose.msk.msra.mxu0 %vm2392_vm6, %v2155_v19  ;;  %v2158_v5 = vcombine.high %v2139_v30, %v2154_v3 }
 0x58b   : > { %v1877_v9 = vcombine.low %v1860_v15, %v1868_v16  ;;  %v1878_v29 = vcombine.high %v1860_v15, %v1868_v16  ;;  %v1893_v13 = vcombine.high %v1876_v6, %v5883_v39  ;;  %v1900_v40 = vrot.slane %v1876_v6, %v6472_v52  ;;  %5636 = vmatprep.subr.mxu0 %v5883_v39 }
 0x58c   : > { %5624 = vmatmul.mubr.msk.f32.vlgmr.msra.gmra.mxu1 %vm2392_vm6, %v1852_v50 }
 0x58d   : > { %5632 = vmatpush3.xpose.msk.msra.mxu1 %vm2392_vm6, %v2156_v25  ;;  %5633 = vmatprep.mubr.msk.f32.mxu1 %vm5884_vm5, %v5883_v39  ;;  %v1885_v31 = vrot.slane %v1877_v9, %v6472_v52  ;;  %v1892_v41 = vrot.slane %v1878_v29, %v6472_v52  ;;  %v1907_v61 = vrot.slane %v1893_v13, %v6472_v52 }
 0x58e   : > { %5641 = vmatprep.subr.mxu1 %v5883_v39 }
 0x58f   : > { %v1908_v58 = vcombine.low %v1885_v31, %v1900_v40  ;;  %v1909_v60 = vcombine.high %v1885_v31, %v1900_v40  ;;  %v1910_v57 = vcombine.low %v1892_v41, %v1907_v61  ;;  %v1911_v63 = vcombine.high %v1892_v41, %v1907_v61 }
 0x591   : > { %5629 = vmatmul.mubr.msk.f32.vlgmr.msra.gmra.mxu0 %vm2392_vm6, %v1908_v58  ;;  %5634 = vmatmul.mubr.msk.f32.vlgmr.msra.gmra.mxu1 %vm2392_vm6, %v1909_v60 }
 0x592   : > { %5637 = vmatpush3.xpose.msk.msra.mxu0 %vm2392_vm6, %v2157_v53  ;;  %5642 = vmatpush3.xpose.msk.msra.mxu1 %vm2392_vm6, %v2158_v5 }
 0x593   : > { %5638 = vmatprep.mubr.msk.f32.mxu0 %vm5884_vm5, %v5883_v39  ;;  %5643 = vmatprep.mubr.msk.f32.mxu1 %vm5884_vm5, %v5883_v39 }
 0x594   : > { %5646 = vmatprep.subr.mxu0 %v5883_v39  ;;  %5651 = vmatprep.subr.mxu1 %v5883_v39 }
 0x595   : > { %5639 = vmatmul.mubr.msk.f32.vlgmr.msra.gmra.mxu0 %vm2392_vm6, %v1910_v57  ;;  %5644 = vmatmul.mubr.msk.f32.vlgmr.msra.gmra.mxu1 %vm2392_vm6, %v1911_v63 }
 0x596   : > { %5648 = vmatprep.mubr.msk.f32.mxu0 %vm5884_vm5, %v5883_v39  ;;  %5653 = vmatprep.mubr.msk.f32.mxu1 %vm5884_vm5, %v5883_v39 }
 0x644   : > { %v2465_v0 = vpop.f32.mrf.mxu1  ;;  %v2617_v51 = vpop.f32.mrf.mxu0 }
 0x645   : > { %v3002_v27 = vsel %vm3001_vm7, %v2465_v0, -inf  ;;  %v3008_v59 = vsel %vm3001_vm7, %v2617_v51, -inf }
 0x646   : > { %3003 = vmax.xlane.f32.xlu0 %v3002_v27  ;;  %v5610_v42 = vpop.f32.mrf.mxu1  ;;  %v5620_v43 = vpop.f32.mrf.mxu0 }
 0x648   : > { %v2541_v48 = vpop.f32.mrf.mxu1 }
 0x649   : > { %v3005_v26 = vsel %vm3001_vm7, %v2541_v48, -inf }
 0x64a   : > { %3009 = vmax.xlane.f32.xlu0 %v3008_v59  ;;  %3006 = vmax.xlane.f32.xlu1 %v3005_v26  ;;  %v5615_v7 = vpop.f32.mrf.mxu1 }
 0x64c   : > { %v2693_v1 = vpop.f32.mrf.mxu1 }
 0x64d   : > { %v3011_v6 = vsel %vm3001_vm7, %v2693_v1, -inf }
 0x64e   : > { %v5625_v10 = vpop.f32.mrf.mxu1 }
 0x651   : > { %v2769_v56 = vpop.f32.mrf.mxu0  ;;  %v6584_v34 = vpop.f32.mrf.mxu1 }
 0x652   : > { %v3014_v14 = vsel %vm3001_vm7, %v2769_v56, -inf  ;;  %v3017_v25 = vsel %vm3001_vm7, %v6584_v34, -inf }
 0x653   : > { %v5635_v8 = vpop.f32.mrf.mxu1  ;;  %3015 = vmax.xlane.f32.xlu0 %v3014_v14  ;;  %v5630_v4 = vpop.f32.mrf.mxu0 }
 0x655   : > { %v6587_v15 = vpop.f32.mrf.mxu0  ;;  %v6589_v16 = vpop.f32.mrf.mxu1 }
 0x656   : > { %v3023_v9 = vsel %vm3001_vm7, %v6589_v16, -inf }
 0x657   : > { %v5645_v50 = vpop.f32.mrf.mxu1  ;;  %3012 = vmax.xlane.f32.xlu0 %v3011_v6  ;;  %v5640_v19 = vpop.f32.mrf.mxu0 }
 0x65b   : > { %2163 = vrot.lane.b32.xlu1 %v6433_v37, %s5887_s20  ;;  %v3020_v37 = vsel %vm3001_vm7, %v6587_v15, -inf }
 0x65f   : > { %2167 = vrot.lane.b32.xlu1 %v6431_v36, %s5887_s20 }
 0x663   : > { %2171 = vrot.lane.b32.xlu1 %v6437_v38, %s5887_s20 }
 0x66d   : > { %2159 = vrot.lane.b32.xlu0 %v6411_v32, %s5887_s20 }
 0x687   : > { %3018 = vmax.xlane.f32.xlu1 %v3017_v25 }
 0x68b   : > { %3024 = vmax.xlane.f32.xlu1 %v3023_v9 }
 0x68c   : > { %3021 = vmax.xlane.f32.xlu0 %v3020_v37 }
 0x69c   : > { %2165 = vrot.lane.b32.xlu1 %v6443_v62, %s5887_s20 }
 0x6a2   : > { %2161 = vrot.lane.b32.xlu0 %v6417_v33, %s5887_s20 }
 0x6cf   : > { %v3004_v36 = vpop.xlane.xlu0 %3003 }
 0x6d0   : > { %v3026_v32 = vsub.f32 %v2465_v0, %v3004_v36 }
 0x6d2   : > { %v3034_v38 = vmul.f32 1.442695, %v3026_v32 }
 0x6d3   : > { %v3007_v29 = vpop.xlane.xlu1 %3006  ;;  %v3010_v13 = vpop.xlane.xlu0 %3009 }
 0x6d4   : > { %5795 = vpow2.f32 %v3034_v38  ;;  %v3027_v30 = vsub.f32 %v2541_v48, %v3007_v29  ;;  %v3028_v3 = vsub.f32 %v2617_v51, %v3010_v13 }
 0x6d6   : > { %v3036_v40 = vmul.f32 1.442695, %v3027_v30  ;;  %v3038_v31 = vmul.f32 1.442695, %v3028_v3 }
 0x6d7   : > { %v2164_v58 = vpop.permute.xlu1 %2163 }
 0x6d8   : > { %5797 = vpow2.f32 %v3036_v40 }
 0x6d9   : > { %5799 = vpow2.f32 %v3038_v31 }
 0x6db   : > { %v2168_v60 = vpop.permute.xlu1 %2167 }
 0x6dc   : > { %v3016_v41 = vpop.xlane.xlu0 %3015 }
 0x6dd   : > { %v3030_v61 = vsub.f32 %v2769_v56, %v3016_v41 }
 0x6df   : > { %v3042_v62 = vmul.f32 1.442695, %v3030_v61  ;;  %v2172_v33 = vpop.permute.xlu1 %2171 }
 0x6e0   : > { %v3013_v5 = vpop.xlane.xlu0 %3012  ;;  %v2199_v0 = vcombine.low %v2164_v58, %v2172_v33  ;;  %v2200_v51 = vcombine.high %v2164_v58, %v2172_v33 }
 0x6e1   : > { %v6610_v53 = vpop.eup %5795  ;;  %5801 = vpow2.f32 %v3042_v62  ;;  %v3029_v57 = vsub.f32 %v2693_v1, %v3013_v5 }
 0x6e2   : > { %v3050_v63 = vsel %vm3001_vm7, %v6610_v53, 0.0  ;;  %v2207_v10 = vrot.slane %v2199_v0, %v6467_v35  ;;  %v2214_v56 = vrot.slane %v2200_v51, %v6467_v35 }
 0x6e3   : > { %v3040_v27 = vmul.f32 1.442695, %v3029_v57  ;;  %3051 = vadd.xlane.f32.xlu0 %v3050_v63 }
 0x6e4   : > { %v2160_v43 = vpop.permute.xlu0 %2159 }
 0x6e5   : > { %v6614_v42 = vpop.eup %5797  ;;  %5803 = vpow2.f32 %v3040_v27  ;;  %v2183_v59 = vcombine.low %v2160_v43, %v2168_v60  ;;  %v2184_v26 = vcombine.high %v2160_v43, %v2168_v60 }
 0x6e6   : > { %v6616_v48 = vpop.eup %5799  ;;  %v3053_v7 = vsel %vm3001_vm7, %v6614_v42, 0.0 }
 0x6e7   : > { %3054 = vadd.xlane.f32.xlu1 %v3053_v7  ;;  %v3056_v1 = vsel %vm3001_vm7, %v6616_v48, 0.0  ;;  %v2191_v14 = vrot.slane %v2183_v59, %v6467_v35  ;;  %v2198_v8 = vrot.slane %v2184_v26, %v6467_v35 }
 0x6e8   : > { %3057 = vadd.xlane.f32.xlu0 %v3056_v1 }
 0x6e9   : > { %v2215_v4 = vcombine.low %v2191_v14, %v2207_v10  ;;  %v2216_v6 = vcombine.high %v2191_v14, %v2207_v10  ;;  %v2231_v50 = vcombine.low %v2198_v8, %v2214_v56  ;;  %v2232_v19 = vcombine.high %v2198_v8, %v2214_v56 }
 0x6eb   : > { %v2223_v25 = vrot.slane %v2215_v4, %v6472_v52  ;;  %v2230_v9 = vrot.slane %v2216_v6, %v6472_v52  ;;  %v6629_v37 = vrot.slane %v2231_v50, %v6472_v52  ;;  %v6632_v36 = vrot.slane %v2232_v19, %v6472_v52 }
 0x6ed   : > { %v2275_v32 = vcombine.low %v2223_v25, %v2230_v9  ;;  %v5464_v38 = vcombine.high %v2223_v25, %v2230_v9  ;;  %v2297_v29 = vrot.slane %v6629_v37, %v6467_v35  ;;  %v5465_v13 = vcombine.high %v6629_v37, %v6632_v36 }
 0x6ee   : > { %v6638_v30 = vpop.eup %5801 }
 0x6ef   : > { %v2282_v3 = vrot.slane %v2275_v32, %v6467_v35  ;;  %v2290_v40 = vrot.slane %v5464_v38, %v6467_v35  ;;  %v2314_v31 = vcombine.high %v2297_v29, %v5883_v39  ;;  %v3062_v58 = vsel %vm3001_vm7, %v6638_v30, 0.0 }
 0x6f0   : > { %3063 = vadd.xlane.f32.xlu0 %v3062_v58  ;;  %v2321_v62 = vrot.slane %v2297_v29, %v6472_v52 }
 0x6f1   : > { %v2298_v60 = vcombine.low %v2282_v3, %v2290_v40  ;;  %v2299_v41 = vcombine.high %v2282_v3, %v2290_v40  ;;  %v2328_v33 = vrot.slane %v2314_v31, %v6472_v52 }
 0x6f2   : > { %v6645_v61 = vpop.eup %5803 }
 0x6f3   : > { %v3059_v5 = vsel %vm3001_vm7, %v6645_v61, 0.0  ;;  %v2306_v57 = vrot.slane %v2298_v60, %v6472_v52  ;;  %v2313_v63 = vrot.slane %v2299_v41, %v6472_v52 }
 0x6f4   : > { %3060 = vadd.xlane.f32.xlu1 %v3059_v5 }
 0x6f5   : > { %v2329_v0 = vcombine.low %v2306_v57, %v2321_v62  ;;  %v2330_v51 = vcombine.high %v2306_v57, %v2321_v62  ;;  %v2331_v27 = vcombine.low %v2313_v63, %v2328_v33  ;;  %v2332_v43 = vcombine.high %v2313_v63, %v2328_v33 }
 0x6f7   : > { %5647 = vmatpush3.msk.msra.mxu0 %vm3094_vm8, %v2329_v0  ;;  %5652 = vmatpush3.msk.msra.mxu1 %vm3094_vm8, %v2330_v51 }
 0x6f8   : > { %5656 = vmatprep.subr.mxu0 %v5883_v39  ;;  %5661 = vmatprep.subr.mxu1 %v5883_v39 }
 0x710   : > { %v3019_v59 = vpop.xlane.xlu1 %3018 }
 0x711   : > { %v3031_v26 = vsub.f32 %v6584_v34, %v3019_v59 }
 0x713   : > { %v3044_v7 = vmul.f32 1.442695, %v3031_v26 }
 0x714   : > { %v3025_v1 = vpop.xlane.xlu1 %3024 }
 0x715   : > { %5805 = vpow2.f32 %v3044_v7  ;;  %v3033_v10 = vsub.f32 %v6589_v16, %v3025_v1  ;;  %v3022_v56 = vpop.xlane.xlu0 %3021  ;;  %v2340_v7 = vrot.slane %v5465_v13, %v6467_v35 }
 0x716   : > { %v3032_v8 = vsub.f32 %v6587_v15, %v3022_v56 }
 0x717   : > { %v3048_v14 = vmul.f32 1.442695, %v3033_v10 }
 0x718   : > { %v3046_v4 = vmul.f32 1.442695, %v3032_v8  ;;  %v2166_v9 = vpop.permute.xlu1 %2165 }
 0x719   : > { %5807 = vpow2.f32 %v3048_v14  ;;  %v2162_v16 = vpop.permute.xlu0 %2161 }
 0x71a   : > { %5809 = vpow2.f32 %v3046_v4 }
 0x722   : > { %v6660_v6 = vpop.eup %5805 }
 0x723   : > { %v3065_v50 = vsel %vm3001_vm7, %v6660_v6, 0.0 }
 0x724   : > { %3066 = vadd.xlane.f32.xlu1 %v3065_v50 }
 0x726   : > { %v6664_v19 = vpop.eup %5807 }
 0x727   : > { %v3071_v34 = vsel %vm3001_vm7, %v6664_v19, 0.0  ;;  %v6668_v25 = vpop.eup %5809 }
 0x728   : > { %3072 = vadd.xlane.f32.xlu1 %v3071_v34  ;;  %v3068_v15 = vsel %vm3001_vm7, %v6668_v25, 0.0 }
 0x729   : > { %3069 = vadd.xlane.f32.xlu0 %v3068_v15 }
 0x739   : > { %2173 = vrot.lane.b32.xlu1 %v6449_v12, %s5887_s20 }
 0x73f   : > { %2169 = vrot.lane.b32.xlu0 %v6447_v2, %s5887_s20 }
 0x76c   : > { %v3052_v32 = vpop.xlane.xlu0 %3051 }
 0x76d   : > { %5811 = vrcp.f32 %v3052_v32 }
 0x770   : > { %v3055_v38 = vpop.xlane.xlu1 %3054 }
 0x771   : > { %5813 = vrcp.f32 %v3055_v38  ;;  %v3058_v29 = vpop.xlane.xlu0 %3057 }
 0x772   : > { %5815 = vrcp.f32 %v3058_v29 }
 0x779   : > { %v3064_v41 = vpop.xlane.xlu0 %3063 }
 0x77a   : > { %v5812_v3 = vpop.eup %5811 }
 0x77b   : > { %v3082_v40 = vmul.f32 %v5812_v3, %v6610_v53 }
 0x77d   : > { %v3061_v58 = vpop.xlane.xlu1 %3060  ;;  %5649 = vmatmul.mubr.msk.f32.vlgmr.msra.gmra.mxu0 %vm3090_vm9, %v3082_v40 }
 0x77e   : > { %v5814_v31 = vpop.eup %5813  ;;  %5817 = vrcp.f32 %v3061_v58  ;;  %5657 = vmatpush3.msk.msra.mxu0 %vm3094_vm8, %v2331_v27  ;;  %5658 = vmatprep.mubr.msk.f32.mxu0 %vm5884_vm5, %v5883_v39 }
 0x77f   : > { %v5816_v12 = vpop.eup %5815  ;;  %v3083_v2 = vmul.f32 %v5814_v31, %v6614_v42  ;;  %5666 = vmatprep.subr.mxu0 %v5883_v39  ;;  %5819 = vrcp.f32 %v3064_v41 }
 0x780   : > { %v3084_v60 = vmul.f32 %v5816_v12, %v6616_v48 }
 0x781   : > { %5654 = vmatmul.mubr.msk.f32.vlgmr.msra.gmra.mxu1 %vm3090_vm9, %v3083_v2 }
 0x782   : > { %5659 = vmatmul.mubr.msk.f32.vlgmr.msra.gmra.mxu0 %vm3090_vm9, %v3084_v60  ;;  %5662 = vmatpush3.msk.msra.mxu1 %vm3094_vm8, %v2332_v43 }
 0x783   : > { %5663 = vmatprep.mubr.msk.f32.mxu1 %vm5884_vm5, %v5883_v39  ;;  %5671 = vmatprep.subr.mxu1 %v5883_v39 }
 0x784   : > { %5668 = vmatprep.mubr.msk.f32.mxu0 %vm5884_vm5, %v5883_v39 }
 0x78b   : > { %v5818_v53 = vpop.eup %5817 }
 0x78c   : > { %v3085_v42 = vmul.f32 %v5818_v53, %v6645_v61  ;;  %v5820_v4 = vpop.eup %5819 }
 0x78d   : > { %v3086_v32 = vmul.f32 %v5820_v4, %v6638_v30 }
 0x78e   : > { %5664 = vmatmul.mubr.msk.f32.vlgmr.msra.gmra.mxu1 %vm3090_vm9, %v3085_v42 }
 0x78f   : > { %5673 = vmatprep.mubr.msk.f32.mxu1 %vm5884_vm5, %v5883_v39 }
 0x7ad   : > { %v3067_v48 = vpop.xlane.xlu1 %3066 }
 0x7ae   : > { %5821 = vrcp.f32 %v3067_v48 }
 0x7b1   : > { %v3073_v62 = vpop.xlane.xlu1 %3072 }
 0x7b2   : > { %v3070_v33 = vpop.xlane.xlu0 %3069  ;;  %5823 = vrcp.f32 %v3073_v62 }
 0x7b3   : > { %5825 = vrcp.f32 %v3070_v33 }
 0x7b5   : > { %v2174_v5 = vpop.permute.xlu1 %2173 }
 0x7b6   : > { %v2259_v57 = vcombine.low %v2166_v9, %v2174_v5  ;;  %v2170_v63 = vpop.permute.xlu0 %2169 }
 0x7b7   : > { %v2251_v51 = vcombine.low %v2162_v16, %v2170_v63 }
 0x7b8   : > { %v2266_v0 = vrot.slane %v2259_v57, %v6467_v35 }
 0x7b9   : > { %v2258_v27 = vrot.slane %v2251_v51, %v6467_v35 }
 0x7bb   : > { %v2267_v61 = vcombine.low %v2258_v27, %v2266_v0  ;;  %v5822_v50 = vpop.eup %5821 }
 0x7bc   : > { %v3087_v38 = vmul.f32 %v5822_v50, %v6660_v6 }
 0x7bd   : > { %v2274_v43 = vrot.slane %v2267_v61, %v6472_v52 }
 0x7bf   : > { %v2341_v59 = vcombine.low %v6632_v36, %v2274_v43  ;;  %v2349_v26 = vcombine.high %v2274_v43, %v5883_v39  ;;  %v5824_v13 = vpop.eup %5823 }
 0x7c0   : > { %v5826_v29 = vpop.eup %5825  ;;  %v3089_v6 = vmul.f32 %v5824_v13, %v6664_v19 }
 0x7c1   : > { %v2348_v1 = vrot.slane %v2341_v59, %v6467_v35  ;;  %v2356_v10 = vrot.slane %v2349_v26, %v6467_v35  ;;  %v3088_v30 = vmul.f32 %v5826_v29, %v6668_v25 }
 0x7c3   : > { %v2357_v56 = vcombine.low %v2340_v7, %v2348_v1  ;;  %v2358_v14 = vcombine.high %v2340_v7, %v2348_v1  ;;  %v2373_v8 = vcombine.high %v2356_v10, %v5883_v39  ;;  %v2380_v34 = vrot.slane %v2356_v10, %v6472_v52 }
 0x7c5   : > { %v2365_v15 = vrot.slane %v2357_v56, %v6472_v52  ;;  %v2372_v16 = vrot.slane %v2358_v14, %v6472_v52  ;;  %v2387_v9 = vrot.slane %v2373_v8, %v6472_v52 }
 0x7c7   : > { %v2388_v37 = vcombine.low %v2365_v15, %v2380_v34  ;;  %v2389_v36 = vcombine.high %v2365_v15, %v2380_v34  ;;  %v2390_v3 = vcombine.low %v2372_v16, %v2387_v9  ;;  %v2391_v40 = vcombine.high %v2372_v16, %v2387_v9 }
 0x7c9   : > { %5667 = vmatpush3.msk.msra.mxu0 %vm3094_vm8, %v2388_v37  ;;  %5672 = vmatpush3.msk.msra.mxu1 %vm3094_vm8, %v2389_v36 }
 0x7ca   : > { %5669 = vmatmul.mubr.msk.f32.vlgmr.msra.gmra.mxu0 %vm3090_vm9, %v3086_v32  ;;  %5674 = vmatmul.mubr.msk.f32.vlgmr.msra.gmra.mxu1 %vm3090_vm9, %v3087_v38 }
 0x7cb   : > { %5676 = vmatprep.subr.mxu0 %v5883_v39  ;;  %5681 = vmatprep.subr.mxu1 %v5883_v39 }
 0x7cc   : > { %5677 = vmatpush3.msk.msra.mxu0 %vm3094_vm8, %v2390_v3  ;;  %5682 = vmatpush3.msk.msra.mxu1 %vm3094_vm8, %v2391_v40 }
 0x7cd   : > { %5678 = vmatprep.mubr.msk.f32.mxu0 %vm5884_vm5, %v5883_v39  ;;  %5683 = vmatprep.mubr.msk.f32.mxu1 %vm5884_vm5, %v5883_v39 }
 0x7ce   : > { %5679 = vmatmul.mubr.msk.f32.vlgmr.msra.gmra.mxu0 %vm3090_vm9, %v3088_v30  ;;  %5684 = vmatmul.mubr.msk.f32.vlgmr.msra.gmra.mxu1 %vm3090_vm9, %v3089_v6 }
 0x83d   : > { %v3164_v31 = vpop.f32.mrf.mxu0 }
 0x83f   : > { %v5650_v58 = vpop.f32.mrf.mxu0 }
 0x841   : > { %v3240_v12 = vpop.f32.mrf.mxu1 }
 0x842   : > { %v3316_v2 = vpop.f32.mrf.mxu0 }
 0x843   : > { %v3700_v60 = vcombine.low %v3164_v31, %v3316_v2  ;;  %v3701_v53 = vcombine.high %v3164_v31, %v3316_v2  ;;  %v5655_v42 = vpop.f32.mrf.mxu1 }
 0x844   : > { %v5660_v25 = vpop.f32.mrf.mxu0 }
 0x845   : > { %v3708_v33 = vrot.slane %v3700_v60, %v6467_v35  ;;  %v3715_v5 = vrot.slane %v3701_v53, %v6467_v35  ;;  %v3951_v60 = vld [vmem:[%s6039_s21 + $0x18] sm:$0xff] }
 0x846   : > { %5686 = vmatprep.subr.mxu1 %v3951_v60 }
 0x847   : > { %5687 = vmatpush3.msra.mxu1 %v3951_v60 }
 0x84e   : > { %v3392_v48 = vpop.f32.mrf.mxu1 }
 0x84f   : > { %v3716_v19 = vcombine.low %v3240_v12, %v3392_v48  ;;  %v3717_v41 = vcombine.high %v3240_v12, %v3392_v48 }
 0x850   : > { %v5665_v62 = vpop.f32.mrf.mxu1 }
 0x851   : > { %v3724_v57 = vrot.slane %v3716_v19, %v6467_v35  ;;  %v3731_v63 = vrot.slane %v3717_v41, %v6467_v35 }
 0x853   : > { %v3732_v0 = vcombine.low %v3708_v33, %v3724_v57  ;;  %v3733_v51 = vcombine.high %v3708_v33, %v3724_v57  ;;  %v3748_v27 = vcombine.low %v3715_v5, %v3731_v63  ;;  %v3950_v33 = vld [vmem:[%s6039_s21 + $0x10] sm:$0xff]  ;;  %v3949_v5 = vld [vmem:[%s6039_s21 + $0x8] sm:$0xff] }
 0x854   : > { %5688 = vmatprep.subr.mxu1 %v3950_v33 }
 0x855   : > { %v3740_v61 = vrot.slane %v3732_v0, %v6472_v52  ;;  %v3747_v43 = vrot.slane %v3733_v51, %v6472_v52  ;;  %v3757_v53 = vrot.slane %v3748_v27, %v6472_v52  ;;  %5689 = vmatpush3.msra.mxu1 %v3950_v33 }
 0x856   : > { %5690 = vmatprep.subr.mxu1 %v3949_v5 }
 0x857   : > { %v3808_v59 = vcombine.low %v3740_v61, %v3747_v43  ;;  %v5498_v26 = vcombine.high %v3740_v61, %v3747_v43  ;;  %5691 = vmatpush3.msra.mxu1 %v3949_v5 }
 0x859   : > { %v3815_v7 = vrot.slane %v3808_v59, %v6467_v35  ;;  %v3823_v1 = vrot.slane %v5498_v26, %v6467_v35  ;;  %v3948_v26 = vld [vmem:[%s6039_s21] sm:$0xff]  ;;  %s5890_s21 = smov 24  }
 0x85a   : > { %5692 = vmatprep.subr.mxu1 %v3948_v26 }
 0x85b   : > { %v3840_v10 = vcombine.low %v3815_v7, %v3823_v1  ;;  %v3841_v56 = vcombine.high %v3815_v7, %v3823_v1  ;;  %5693 = vmatpush3.msra.mxu1 %v3948_v26 }
 0x85d   : > { %v3848_v7 = vrot.slane %v3840_v10, %v6472_v52 }
 0x88a   : > { %v3468_v14 = vpop.f32.mrf.mxu0  ;;  %v3544_v8 = vpop.f32.mrf.mxu1 }
 0x88c   : > { %v5670_v4 = vpop.f32.mrf.mxu0  ;;  %v5675_v50 = vpop.f32.mrf.mxu1 }
 0x88e   : > { %v3620_v34 = vpop.f32.mrf.mxu0  ;;  %v3696_v15 = vpop.f32.mrf.mxu1 }
 0x88f   : > { %v3758_v16 = vcombine.low %v3468_v14, %v3620_v34  ;;  %v3759_v9 = vcombine.high %v3468_v14, %v3620_v34  ;;  %v3774_v37 = vcombine.low %v3544_v8, %v3696_v15  ;;  %v3775_v36 = vcombine.high %v3544_v8, %v3696_v15 }
 0x890   : > { %v5680_v13 = vpop.f32.mrf.mxu0  ;;  %v5685_v32 = vpop.f32.mrf.mxu1  ;;  %v3855_v14 = vrot.slane %v3841_v56, %v6472_v52 }
 0x891   : > { %v3766_v38 = vrot.slane %v3758_v16, %v6467_v35  ;;  %v3773_v29 = vrot.slane %v3759_v9, %v6467_v35  ;;  %v3782_v3 = vrot.slane %v3774_v37, %v6467_v35  ;;  %v3789_v40 = vrot.slane %v3775_v36, %v6467_v35 }
 0x893   : > { %v3790_v30 = vcombine.low %v3766_v38, %v3782_v3  ;;  %v3791_v6 = vcombine.high %v3766_v38, %v3782_v3  ;;  %v3806_v31 = vcombine.low %v3773_v29, %v3789_v40  ;;  %v5499_v40 = vld [vmem:[%s7125_s4] ss:$0 sm:$0xff] }
 0x895   : > { %v3798_v58 = vrot.slane %v3790_v30, %v6472_v52  ;;  %v3805_v12 = vrot.slane %v3791_v6, %v6472_v52  ;;  %v3890_v2 = vrot.slane %v3806_v31, %v6472_v52 }
 0x897   : > { %v3807_v42 = vcombine.high %v3798_v58, %v5883_v39  ;;  %v3832_v25 = vcombine.low %v3798_v58, %v3805_v12  ;;  %v3876_v48 = vcombine.high %v3805_v12, %v5883_v39  ;;  %v3897_v62 = vrot.slane %v3890_v2, %v6467_v35 }
 0x899   : > { %v3824_v19 = vcombine.low %v3757_v53, %v3807_v42  ;;  %v3883_v41 = vrot.slane %v3876_v48, %v6467_v35  ;;  %v3839_v51 = vrot.slane %v3832_v25, %v6467_v35 }
 0x89b   : > { %v3899_v57 = vcombine.high %v3883_v41, %v3897_v62  ;;  %v3898_v63 = vcombine.low %v3883_v41, %v3897_v62  ;;  %v3831_v0 = vrot.slane %v3824_v19, %v6467_v35 }
 0x89d   : > { %v3913_v27 = vrot.slane %v3899_v57, %v6472_v52  ;;  %v3906_v61 = vrot.slane %v3898_v63, %v6472_v52  ;;  %v3856_v43 = vcombine.low %v3831_v0, %v3839_v51  ;;  %v3857_v59 = vcombine.high %v3831_v0, %v3839_v51 }
 0x89f   : > { %3928 = vrot.lane.b32.xlu1 %v3913_v27, %s5888_s3  ;;  %v3864_v1 = vrot.slane %v3856_v43, %v6472_v52  ;;  %v3871_v35 = vrot.slane %v3857_v59, %v6472_v52  ;;  %v3914_v8 = vcombine.high %v3906_v61, %v5883_v39  ;;  %v3915_v16 = vcombine.high %v3913_v27, %v5883_v39 }
 0x8a1   : > { %v3873_v4 = vcombine.high %v3848_v7, %v3864_v1  ;;  %v3874_v50 = vcombine.low %v3855_v14, %v3871_v35  ;;  %v3875_v34 = vcombine.high %v3855_v14, %v3871_v35  ;;  %v3872_v15 = vcombine.low %v3848_v7, %v3864_v1 }
 0x8a3   : > { %3920 = vrot.lane.b32.xlu1 %v3914_v8, %s5889_s19  ;;  %3918 = vrot.lane.b32.xlu0 %v3873_v4, %s5889_s19 }
 0x8a7   : > { %3936 = vrot.lane.b32.xlu1 %v3915_v16, %s5890_s21  ;;  %3926 = vrot.lane.b32.xlu0 %v3874_v50, %s5888_s3 }
 0x8ab   : > { %3934 = vrot.lane.b32.xlu0 %v3875_v34, %s5890_s21 }
 0x911   : > { %v3929_v10 = vpop.permute.xlu1 %3928 }
 0x915   : > { %v3919_v52 = vpop.permute.xlu0 %3918  ;;  %v3921_v56 = vpop.permute.xlu1 %3920 }
 0x916   : > { %v3941_v37 = vsel %vm2392_vm6, %v3906_v61, %v3921_v56  ;;  %v3940_v36 = vsel %vm2392_vm6, %v3872_v15, %v3919_v52 }
 0x917   : > { %v3944_v29 = vsel %vm3942_vm10, %v3941_v37, %v3929_v10 }
 0x919   : > { %v3927_v9 = vpop.permute.xlu0 %3926  ;;  %v3937_v13 = vpop.permute.xlu1 %3936 }
 0x91a   : > { %v3943_v32 = vsel %vm3942_vm10, %v3940_v36, %v3927_v9  ;;  %v3947_v3 = vsel %vm3945_vm11, %v3944_v29, %v3937_v13 }
 0x91d   : > { %v3935_v38 = vpop.permute.xlu0 %3934 }
 0x91e   : > { %v3946_v39 = vsel %vm3945_vm11, %v3943_v32, %v3935_v38 }
 0x91f   : > { %5694 = vmatprep.mubr.msk.f32.mxu1 %vm1140_vm3, %v3946_v39 }
 0x920   : > { %5695 = vmatmul.mubr.msk.f32.vlgmr.msra.gmra.mxu1 %vm1140_vm3, %v3947_v3 }
 0x9e0   : > { %v5696_v30 = vpop.f32.mrf.mxu1 }
 0x9e1   : > { %v4037_v6 = vadd.f32 %v5696_v30, %v5499_v40 }
 0x9e2   : > { %v4031_v31 = vpop.f32.mrf.mxu1 }
 0x9e3   : > { %v4097_v58 = vrot.slane %v4037_v6, %v6196_v11  ;;  %v4032_v12 = vadd.f32 %v5499_v40, %v4031_v31 }
 0x9e5   : > { %v4098_v2 = vcombine.high %v4097_v58, %v4097_v58  ;;  %v4042_v60 = vcombine.high %v4032_v12, %v4032_v12  ;;  %v4049_v53 = vrot.slane %v4032_v12, %v6196_v11  ;;  %v4105_v42 = vrot.slane %v4097_v58, %v6196_v11 }
 0x9e7   : > { %v4112_v25 = vrot.slane %v4098_v2, %v6196_v11  ;;  %v4056_v48 = vrot.slane %v4042_v60, %v6196_v11  ;;  %v4057_v19 = vcombine.high %v4049_v53, %v4049_v53  ;;  %v4065_v41 = vrot.slane %v4049_v53, %v6196_v11  ;;  %v7126_v60 = vld [vmem:[#allocation7_spill] sm:$0xff] }
 0x9e8   : > { %v6785_v63 = vadd.f32 %v4105_v42, %v6232_v28  ;;  %v7127_v42 = vld [vmem:[#allocation8_spill] sm:$0xff] }
 0x9e9   : > { %v6780_v62 = vadd.f32 %v4112_v25, %v6218_v23  ;;  %v4058_v33 = vcombine.high %v4056_v48, %v4056_v48  ;;  %v4072_v5 = vrot.slane %v4056_v48, %v6196_v11  ;;  %v4079_v57 = vrot.slane %v4057_v19, %v6196_v11  ;;  %v7128_v48 = vld [vmem:[#allocation9_spill] sm:$0xff] }
 0x9ea   : > { %v4087_v0 = vcombine.high %v4065_v41, %v4065_v41  ;;  %v6792_v59 = vadd.f32 %v4065_v41, %v6203_v17 }
 0x9eb   : > { %v4086_v51 = vrot.slane %v4058_v33, %v6196_v11  ;;  %v4088_v27 = vcombine.high %v4072_v5, %v4072_v5  ;;  %v4089_v61 = vcombine.high %v4079_v57, %v4079_v57  ;;  %v6789_v43 = vadd.f32 %v4079_v57, %v6212_v21 }
 0x9ec   : > { %v6795_v23 = vadd.f32 %v4087_v0, %v6274_v54  ;;  %v4194_v26 = vcombine.low %v6785_v63, %v6780_v62  ;;  %v6803_v1 = vadd.f32 %v4072_v5, %v6206_v18 }
 0x9ed   : > { %v4090_v7 = vcombine.high %v4086_v51, %v4086_v51  ;;  %v6800_v28 = vadd.f32 %v4089_v61, %v6278_v55  ;;  %v6806_v14 = vadd.f32 %v4086_v51, %v6209_v20  ;;  %v4145_v17 = vcombine.low %v6792_v59, %v6789_v43 }
 0x9ee   : > { %v4201_v21 = vrot.slane %v4194_v26, %v6196_v11  ;;  %v6812_v54 = vadd.f32 %v4088_v27, %v6215_v22 }
 0x9ef   : > { %v6815_v35 = vadd.f32 %v4090_v7, %v6222_v24  ;;  %v4146_v55 = vcombine.low %v6795_v23, %v6800_v28  ;;  %v4147_v18 = vcombine.low %v6803_v1, %v6806_v14  ;;  %v4155_v4 = vrot.slane %v4145_v17, %v6196_v11 }
 0x9f0   : > { %v4208_v20 = vrot.slane %v4201_v21, %v6196_v11 }
 0x9f1   : > { %v4148_v8 = vcombine.low %v6812_v54, %v6815_v35  ;;  %v4162_v50 = vrot.slane %v4146_v55, %v6196_v11  ;;  %v4169_v24 = vrot.slane %v4147_v18, %v6196_v11 }
 0x9f2   : > { %v4214_v22 = vsel %vm1144_vm4, %v4208_v20, 0.0 }
 0x9f3   : > { %4215 = vadd.xlane.f32.xlu1 %v4214_v22  ;;  %v4176_v34 = vrot.slane %v4148_v8, %v6196_v11  ;;  %v4177_v15 = vcombine.low %v4155_v4, %v4162_v50 }
 0x9f5   : > { %v4178_v16 = vcombine.low %v4169_v24, %v4176_v34  ;;  %v4185_v10 = vrot.slane %v4177_v15, %v6196_v11 }
 0x9f7   : > { %v4192_v52 = vrot.slane %v4178_v16, %v6196_v11 }
 0x9f9   : > { %v4193_v56 = vcombine.low %v4185_v10, %v4192_v52 }
 0x9fb   : > { %v4211_v9 = vsel %vm1140_vm3, %v4193_v56, 0.0 }
 0x9fc   : > { %4212 = vadd.xlane.f32.xlu0 %v4211_v9 }
 0xa7c   : > { %v4216_v37 = vpop.xlane.xlu1 %4215 }
 0xa7d   : > { %v4218_v36 = vmul.f32 0.03125, %v4216_v37 }
 0xa7f   : > { %v4256_v13 = vrot.slane %v4218_v36, %v6249_v44  ;;  %v4260_v32 = vrot.slane %v4218_v36, %v6252_v45 }
 0xa81   : > { %v6835_v38 = vsub.f32 %v6785_v63, %v4256_v13  ;;  %v6838_v29 = vsub.f32 %v6780_v62, %v4260_v32 }
 0xa83   : > { %v4289_v40 = vmul.f32 %v6835_v38, %v6835_v38  ;;  %v4290_v30 = vmul.f32 %v6838_v29, %v6838_v29 }
 0xa85   : > { %v4213_v39 = vpop.xlane.xlu0 %4212  ;;  %v4350_v52 = vcombine.low %v4289_v40, %v4290_v30  ;;  %v4588_v30 = vld [vmem:[%s6056_s8 + $0x18] sm:$0xff] }
 0xa86   : > { %v4217_v3 = vmul.f32 0.03125, %v4213_v39  ;;  %5697 = vmatprep.subr.mxu1 %v4588_v30 }
 0xa87   : > { %v4357_v13 = vrot.slane %v4350_v52, %v6196_v11  ;;  %5698 = vmatpush3.msra.mxu1 %v4588_v30 }
 0xa88   : > { %v4224_v6 = vrot.slane %v4217_v3, %v6249_v44  ;;  %v4228_v31 = vrot.slane %v4217_v3, %v6252_v45  ;;  %v4232_v58 = vrot.slane %v4217_v3, %v6255_v46  ;;  %v4236_v12 = vrot.slane %v4217_v3, %v6258_v47 }
 0xa89   : > { %v4240_v2 = vrot.slane %v4217_v3, %v6261_v49  ;;  %v4244_v53 = vrot.slane %v4217_v3, %v7126_v60  ;;  %v4248_v25 = vrot.slane %v4217_v3, %v7127_v42  ;;  %v4252_v19 = vrot.slane %v4217_v3, %v7128_v48 }
 0xa8a   : > { %v6853_v41 = vsub.f32 %v6792_v59, %v4224_v6  ;;  %v6856_v33 = vsub.f32 %v6789_v43, %v4228_v31  ;;  %v6859_v5 = vsub.f32 %v6795_v23, %v4232_v58  ;;  %v6862_v57 = vsub.f32 %v6800_v28, %v4236_v12  ;;  %v4587_v6 = vld [vmem:[%s6056_s8 + $0x10] sm:$0xff]  ;;  %v4586_v31 = vld [vmem:[%s6056_s8 + $0x8] sm:$0xff]  ;;  %v4585_v58 = vld [vmem:[%s6056_s8] sm:$0xff]  ;;  %s7131_s8 = sld [smem:[#allocation19_spill]] (!%p5510_p5) }
 0xa8b   : > { %v6865_v0 = vsub.f32 %v6803_v1, %v4240_v2  ;;  %v6868_v51 = vsub.f32 %v6806_v14, %v4244_v53  ;;  %v6871_v27 = vsub.f32 %v6812_v54, %v4248_v25  ;;  %v6874_v61 = vsub.f32 %v6815_v35, %v4252_v19  ;;  %5699 = vmatprep.subr.mxu1 %v4587_v6  ;;  %v5502_v12 = vld [vmem:[%s795_s18] ss:$0 sm:$0xff] }
 0xa8c   : > { %v4281_v26 = vmul.f32 %v6853_v41, %v6853_v41  ;;  %v4282_v7 = vmul.f32 %v6856_v33, %v6856_v33  ;;  %v4283_v21 = vmul.f32 %v6859_v5, %v6859_v5  ;;  %v4284_v17 = vmul.f32 %v6862_v57, %v6862_v57  ;;  %5700 = vmatpush3.msra.mxu1 %v4587_v6  ;;  %v5503_v2 = vld [vmem:[%s798_s23] ss:$0 sm:$0xff] }
 0xa8d   : > { %v4285_v55 = vmul.f32 %v6865_v0, %v6865_v0  ;;  %v4286_v18 = vmul.f32 %v6868_v51, %v6868_v51  ;;  %v4287_v20 = vmul.f32 %v6871_v27, %v6871_v27  ;;  %v4288_v8 = vmul.f32 %v6874_v61, %v6874_v61  ;;  %5701 = vmatprep.subr.mxu1 %v4586_v31 }
 0xa8e   : > { %v4301_v4 = vcombine.low %v4281_v26, %v4282_v7  ;;  %v4302_v50 = vcombine.low %v4283_v21, %v4284_v17  ;;  %v4364_v3 = vrot.slane %v4357_v13, %v6196_v11  ;;  %5702 = vmatpush3.msra.mxu1 %v4586_v31  ;;  %v4446_v19 = vcombine.high %v5502_v12, %v5502_v12 }
 0xa8f   : > { %v4303_v22 = vcombine.low %v4285_v55, %v4286_v18  ;;  %v4304_v24 = vcombine.low %v4287_v20, %v4288_v8  ;;  %5703 = vmatprep.subr.mxu1 %v4585_v58  ;;  %v4518_v26 = vcombine.high %v5503_v2, %v5503_v2  ;;  %v4453_v17 = vrot.slane %v5502_v12, %v6196_v11 }
 0xa90   : > { %v4311_v34 = vrot.slane %v4301_v4, %v6196_v11  ;;  %v4318_v15 = vrot.slane %v4302_v50, %v6196_v11  ;;  %v4370_v40 = vsel %vm1144_vm4, %v4364_v3, 0.0  ;;  %5704 = vmatpush3.msra.mxu1 %v4585_v58  ;;  %v4460_v18 = vrot.slane %v4446_v19, %v6196_v11 }
 0xa91   : > { %v4325_v16 = vrot.slane %v4303_v22, %v6196_v11  ;;  %v4332_v10 = vrot.slane %v4304_v24, %v6196_v11  ;;  %v4525_v20 = vrot.slane %v5503_v2, %v6196_v11  ;;  %v4532_v8 = vrot.slane %v4518_v26, %v6196_v11 }
 0xa92   : > { %v4333_v56 = vcombine.low %v4311_v34, %v4318_v15  ;;  %v4461_v50 = vcombine.high %v4453_v17, %v4453_v17  ;;  %v4462_v22 = vcombine.high %v4460_v18, %v4460_v18  ;;  %v4469_v15 = vrot.slane %v4453_v17, %v6196_v11 }
 0xa93   : > { %v4334_v9 = vcombine.low %v4325_v16, %v4332_v10  ;;  %v4533_v24 = vcombine.high %v4525_v20, %v4525_v20  ;;  %v4534_v34 = vcombine.high %v4532_v8, %v4532_v8  ;;  %v4476_v10 = vrot.slane %v4460_v18, %v6196_v11 }
 0xa94   : > { %v4341_v37 = vrot.slane %v4333_v56, %v6196_v11  ;;  %v4483_v16 = vrot.slane %v4461_v50, %v6196_v11  ;;  %v4490_v52 = vrot.slane %v4462_v22, %v6196_v11  ;;  %v4541_v56 = vrot.slane %v4525_v20, %v6196_v11 }
 0xa95   : > { %v4348_v36 = vrot.slane %v4334_v9, %v6196_v11  ;;  %v4548_v9 = vrot.slane %v4532_v8, %v6196_v11  ;;  %v4491_v13 = vcombine.high %v4469_v15, %v4469_v15 }
 0xa96   : > { %v4494_v3 = vcombine.high %v4490_v52, %v4490_v52  ;;  %v4563_v30 = vcombine.high %v4541_v56, %v4541_v56 }
 0xa97   : > { %v4349_v32 = vcombine.low %v4341_v37, %v4348_v36  ;;  %v4555_v37 = vrot.slane %v4533_v24, %v6196_v11  ;;  %v4562_v36 = vrot.slane %v4534_v34, %v6196_v11  ;;  %v4564_v6 = vcombine.high %v4548_v9, %v4548_v9 }
 0xa99   : > { %v4367_v39 = vsel %vm1140_vm3, %v4349_v32, 0.0  ;;  %v4492_v32 = vcombine.high %v4476_v10, %v4476_v10  ;;  %v4565_v31 = vcombine.high %v4555_v37, %v4555_v37  ;;  %v4566_v58 = vcombine.high %v4562_v36, %v4562_v36 }
 0xa9a   : > { %4368 = vadd.xlane.f32.xlu0 %v4367_v39  ;;  %v4493_v39 = vcombine.high %v4483_v16, %v4483_v16 }
 0xa9e   : > { %4371 = vadd.xlane.f32.xlu0 %v4370_v40 }
 0xb23   : > { %v4369_v53 = vpop.xlane.xlu0 %4368 }
 0xb24   : > { %v4373_v25 = vmul.f32 0.03125, %v4369_v53 }
 0xb26   : > { %v4375_v7 = vadd.f32 1e-05, %v4373_v25 }
 0xb27   : > { %v4372_v21 = vpop.xlane.xlu0 %4371 }
 0xb28   : > { %5827 = vrsqrt.f32 %v4375_v7  ;;  %v4374_v55 = vmul.f32 0.03125, %v4372_v21 }
 0xb2a   : > { %v4376_v4 = vadd.f32 1e-05, %v4374_v55 }
 0xb2c   : > { %5829 = vrsqrt.f32 %v4376_v4 }
 0xb35   : > { %v5828_v40 = vpop.eup %5827 }
 0xb36   : > { %v4384_v12 = vrot.slane %v5828_v40, %v6249_v44  ;;  %v4388_v2 = vrot.slane %v5828_v40, %v6252_v45  ;;  %v4392_v53 = vrot.slane %v5828_v40, %v6255_v46  ;;  %v4396_v25 = vrot.slane %v5828_v40, %v6258_v47 }
 0xb37   : > { %v4400_v19 = vrot.slane %v5828_v40, %v6261_v49  ;;  %v4404_v26 = vrot.slane %v5828_v40, %v7126_v60  ;;  %v4408_v7 = vrot.slane %v5828_v40, %v7127_v42  ;;  %v4412_v21 = vrot.slane %v5828_v40, %v7128_v48 }
 0xb38   : > { %v4431_v17 = vmul.f32 %v4384_v12, %v6853_v41  ;;  %v4432_v55 = vmul.f32 %v4388_v2, %v6856_v33  ;;  %v4433_v18 = vmul.f32 %v4392_v53, %v6859_v5  ;;  %v4434_v20 = vmul.f32 %v4396_v25, %v6862_v57 }
 0xb39   : > { %v5830_v8 = vpop.eup %5829  ;;  %v4435_v46 = vmul.f32 %v4400_v19, %v6865_v0  ;;  %v4436_v47 = vmul.f32 %v4404_v26, %v6868_v51  ;;  %v4437_v49 = vmul.f32 %v4408_v7, %v6871_v27  ;;  %v4438_v60 = vmul.f32 %v4412_v21, %v6874_v61  ;;  %v4779_v21 = vld [vmem:[%s6066_s29 + $0x70] sm:$0xff] }
 0xb3a   : > { %v4416_v42 = vrot.slane %v5830_v8, %v6249_v44  ;;  %v4420_v48 = vrot.slane %v5830_v8, %v6252_v45  ;;  %v4503_v41 = vmul.f32 %v4469_v15, %v4431_v17  ;;  %v4504_v4 = vmul.f32 %v4483_v16, %v4432_v55  ;;  %v4778_v17 = vld [vmem:[%s6066_s29 + $0x68] sm:$0xff]  ;;  %v4777_v55 = vld [vmem:[%s6066_s29 + $0x60] sm:$0xff] }
 0xb3b   : > { %v4505_v33 = vmul.f32 %v4491_v13, %v4433_v18  ;;  %v4506_v50 = vmul.f32 %v4493_v39, %v4434_v20  ;;  %v4507_v5 = vmul.f32 %v4476_v10, %v4435_v46  ;;  %v4508_v22 = vmul.f32 %v4490_v52, %v4436_v47  ;;  %v4776_v18 = vld [vmem:[%s6066_s29 + $0x58] sm:$0xff]  ;;  %v4775_v20 = vld [vmem:[%s6066_s29 + $0x50] sm:$0xff]  ;;  %v4774_v8 = vld [vmem:[%s6066_s29 + $0x48] sm:$0xff] }
 0xb3c   : > { %v4439_v57 = vmul.f32 %v4416_v42, %v6835_v38  ;;  %v4440_v0 = vmul.f32 %v4420_v48, %v6838_v29  ;;  %v4509_v24 = vmul.f32 %v4492_v32, %v4437_v49  ;;  %v4510_v51 = vmul.f32 %v4494_v3, %v4438_v60  ;;  %v4773_v46 = vld [vmem:[%s6066_s29 + $0x40] sm:$0xff]  ;;  %v4772_v47 = vld [vmem:[%s6066_s29 + $0x38] sm:$0xff]  ;;  %v4771_v49 = vld [vmem:[%s6066_s29 + $0x30] sm:$0xff] }
 0xb3d   : > { %v4575_v34 = vadd.f32 %v4541_v56, %v4503_v41  ;;  %v4576_v27 = vadd.f32 %v4555_v37, %v4504_v4  ;;  %v4577_v40 = vadd.f32 %v4563_v30, %v4505_v33  ;;  %v4578_v61 = vadd.f32 %v4565_v31, %v4506_v50  ;;  %v4770_v60 = vld [vmem:[%s6066_s29 + $0x28] sm:$0xff]  ;;  %v4769_v42 = vld [vmem:[%s6066_s29 + $0x20] sm:$0xff]  ;;  %v4768_v48 = vld [vmem:[%s6066_s29 + $0x18] sm:$0xff] }
 0xb3e   : > { %v4511_v12 = vmul.f32 %v4469_v15, %v4439_v57  ;;  %v4512_v2 = vmul.f32 %v4483_v16, %v4440_v0  ;;  %v4579_v53 = vadd.f32 %v4548_v9, %v4507_v5  ;;  %v4580_v25 = vadd.f32 %v4562_v36, %v4508_v22  ;;  %v4767_v41 = vld [vmem:[%s6066_s29 + $0x10] sm:$0xff]  ;;  %v4766_v4 = vld [vmem:[%s6066_s29 + $0x8] sm:$0xff]  ;;  %v4765_v33 = vld [vmem:[%s6066_s29] sm:$0xff] }
 0xb3f   : > { %v4581_v19 = vadd.f32 %v4564_v6, %v4509_v24  ;;  %v4582_v26 = vadd.f32 %v4566_v58, %v4510_v51  ;;  %v4606_v13 = vcombine.low %v4575_v34, %v4576_v27  ;;  %v4607_v39 = vcombine.low %v4577_v40, %v4578_v61  ;;  %v4780_v58 = vld [vmem:[%s6066_s29 + $0x78] sm:$0xff]  ;;  %v5504_v50 = vld [vmem:[%s806_s10] ss:$0 sm:$0xff] }
 0xb40   : > { %v4608_v10 = vcombine.low %v4579_v53, %v4580_v25  ;;  %v4583_v52 = vadd.f32 %v4541_v56, %v4511_v12  ;;  %v4584_v7 = vadd.f32 %v4555_v37, %v4512_v2  ;;  %5708 = vmatprep.subr.mxu0 %v4780_v58 }
 0xb41   : > { %v4609_v38 = vcombine.low %v4581_v19, %v4582_v26  ;;  %v4616_v29 = vrot.slane %v4606_v13, %v6196_v11  ;;  %v4623_v32 = vrot.slane %v4607_v39, %v6196_v11  ;;  %5709 = vmatpush3.msra.mxu0 %v4780_v58  ;;  %v5509_v13 = vld [vmem:[%s814_s5] ss:$0 sm:$0xff]  ;;  %s7129_s5 = sld [smem:[#allocation20_spill]] (!%p5510_p5) }
 0xb42   : > { %v4630_v3 = vrot.slane %v4608_v10, %v6196_v11  ;;  %v4655_v15 = vcombine.low %v4583_v52, %v4584_v7  ;;  %5710 = vmatprep.subr.mxu0 %v4779_v21 }
 0xb43   : > { %v4637_v16 = vrot.slane %v4609_v38, %v6196_v11  ;;  %v4638_v9 = vcombine.low %v4616_v29, %v4623_v32  ;;  %5711 = vmatpush3.msra.mxu0 %v4779_v21 }
 0xb44   : > { %v4662_v36 = vrot.slane %v4655_v15, %v6196_v11  ;;  %5712 = vmatprep.subr.mxu0 %v4778_v17 }
 0xb45   : > { %v4639_v30 = vcombine.low %v4630_v3, %v4637_v16  ;;  %v4646_v56 = vrot.slane %v4638_v9, %v6196_v11  ;;  %5713 = vmatpush3.msra.mxu0 %v4778_v17 }
 0xb46   : > { %v4669_v6 = vrot.slane %v4662_v36, %v6196_v11  ;;  %5714 = vmatprep.subr.mxu0 %v4777_v55 }
 0xb47   : > { %v4653_v37 = vrot.slane %v4639_v30, %v6196_v11  ;;  %5715 = vmatpush3.msra.mxu0 %v4777_v55 }
 0xb48   : > { %5716 = vmatprep.subr.mxu0 %v4776_v18 }
 0xb49   : > { %v4654_v31 = vcombine.low %v4646_v56, %v4653_v37  ;;  %5717 = vmatpush3.msra.mxu0 %v4776_v18 }
 0xb4a   : > { %5718 = vmatprep.subr.mxu0 %v4775_v20 }
 0xb4b   : > { %5705 = vmatprep.mubr.msk.f32.mxu1 %vm1140_vm3, %v4654_v31  ;;  %5719 = vmatpush3.msra.mxu0 %v4775_v20 }
 0xb4c   : > { %5706 = vmatmul.mubr.msk.f32.vlgmr.msra.gmra.mxu1 %vm1140_vm3, %v4669_v6  ;;  %5720 = vmatprep.subr.mxu0 %v4774_v8 }
 0xb4d   : > { %5721 = vmatpush3.msra.mxu0 %v4774_v8 }
 0xb4e   : > { %5722 = vmatprep.subr.mxu0 %v4773_v46 }
 0xb4f   : > { %5723 = vmatpush3.msra.mxu0 %v4773_v46 }
 0xb50   : > { %5724 = vmatprep.subr.mxu0 %v4772_v47 }
 0xb51   : > { %5725 = vmatpush3.msra.mxu0 %v4772_v47 }
 0xb52   : > { %5726 = vmatprep.subr.mxu0 %v4771_v49 }
 0xb53   : > { %5727 = vmatpush3.msra.mxu0 %v4771_v49 }
 0xb54   : > { %5728 = vmatprep.subr.mxu0 %v4770_v60 }
 0xb55   : > { %5729 = vmatpush3.msra.mxu0 %v4770_v60 }
 0xb56   : > { %5730 = vmatprep.subr.mxu0 %v4769_v42 }
 0xb57   : > { %5731 = vmatpush3.msra.mxu0 %v4769_v42 }
 0xb58   : > { %5732 = vmatprep.subr.mxu0 %v4768_v48 }
 0xb59   : > { %5733 = vmatpush3.msra.mxu0 %v4768_v48 }
 0xb5a   : > { %5734 = vmatprep.subr.mxu0 %v4767_v41 }
 0xb5b   : > { %5735 = vmatpush3.msra.mxu0 %v4767_v41 }
 0xb5c   : > { %5736 = vmatprep.subr.mxu0 %v4766_v4 }
 0xb5d   : > { %5737 = vmatpush3.msra.mxu0 %v4766_v4 }
 0xb5e   : > { %5738 = vmatprep.subr.mxu0 %v4765_v33 }
 0xb5f   : > { %5739 = vmatpush3.msra.mxu0 %v4765_v33 }
 0xc0c   : > { %v5707_v5 = vpop.f32.mrf.mxu1 }
 0xc0d   : > { %v4746_v22 = vadd.f32 %v5707_v5, %v5504_v50 }
 0xc0e   : > { %v4740_v57 = vpop.f32.mrf.mxu1 }
 0xc0f   : > { %v5508_v0 = vmul.f32 -1.702, %v4746_v22  ;;  %v4741_v24 = vadd.f32 %v5504_v50, %v4740_v57 }
 0xc11   : > { %v4755_v51 = vmul.f32 1.442695, %v5508_v0  ;;  %v5507_v34 = vmul.f32 -1.702, %v4741_v24 }
 0xc13   : > { %5831 = vpow2.f32 %v4755_v51  ;;  %v4753_v27 = vmul.f32 1.442695, %v5507_v34 }
 0xc15   : > { %5833 = vpow2.f32 %v4753_v27 }
 0xc20   : > { %v5832_v40 = vpop.eup %5831 }
 0xc21   : > { %v4758_v61 = vadd.f32 1.0, %v5832_v40 }
 0xc22   : > { %v5834_v12 = vpop.eup %5833 }
 0xc23   : > { %v4757_v2 = vadd.f32 1.0, %v5834_v12  ;;  %5835 = vrcp.f32 %v4758_v61 }
 0xc25   : > { %5837 = vrcp.f32 %v4757_v2 }
 0xc30   : > { %v5836_v53 = vpop.eup %5835 }
 0xc31   : > { %v4764_v26 = vmul.f32 %v5836_v53, %v4746_v22 }
 0xc32   : > { %v5838_v25 = vpop.eup %5837 }
 0xc33   : > { %v4763_v19 = vmul.f32 %v5838_v25, %v4741_v24 }
 0xc35   : > { %5740 = vmatprep.mubr.f32.mxu0 %v4763_v19 }
 0xc36   : > { %5741 = vmatmul.mubr.f32.vlgmr.msra.gmra.mxu0 %v4764_v26 }
 0xcf6   : > { %v5742_v39 = vpop.f32.mrf.mxu0 }
 0xcf7   : > { %v4860_v10 = vadd.f32 %v5742_v39, %v5509_v13 }
 0xcf8   : > { %v4854_v52 = vpop.f32.mrf.mxu0 }
 0xcf9   : > { %v4920_v7 = vrot.slane %v4860_v10, %v6196_v11  ;;  %v4855_v38 = vadd.f32 %v5509_v13, %v4854_v52 }
 0xcfb   : > { %v4865_v29 = vcombine.high %v4855_v38, %v4855_v38  ;;  %v4872_v32 = vrot.slane %v4855_v38, %v6196_v11  ;;  %v4921_v3 = vcombine.high %v4920_v7, %v4920_v7  ;;  %v4928_v37 = vrot.slane %v4920_v7, %v6196_v11 }
 0xcfd   : > { %v4879_v15 = vrot.slane %v4865_v29, %v6196_v11  ;;  %v4880_v16 = vcombine.high %v4872_v32, %v4872_v32  ;;  %v4888_v9 = vrot.slane %v4872_v32, %v6196_v11  ;;  %v4935_v31 = vrot.slane %v4921_v3, %v6196_v11 }
 0xcfe   : > { %v4954_v48 = vadd.f32 %v4928_v37, %v6785_v63 }
 0xcff   : > { %v4881_v36 = vcombine.high %v4879_v15, %v4879_v15  ;;  %v4895_v30 = vrot.slane %v4879_v15, %v6196_v11  ;;  %v4902_v56 = vrot.slane %v4880_v16, %v6196_v11  ;;  %v4910_v6 = vcombine.high %v4888_v9, %v4888_v9 }
 0xd00   : > { %v4946_v55 = vadd.f32 %v4888_v9, %v6792_v59  ;;  %v4955_v41 = vadd.f32 %v4935_v31, %v6780_v62 }
 0xd01   : > { %v4909_v58 = vrot.slane %v4881_v36, %v6196_v11  ;;  %v4911_v21 = vcombine.high %v4895_v30, %v4895_v30  ;;  %v4912_v17 = vcombine.high %v4902_v56, %v4902_v56  ;;  %v4947_v18 = vadd.f32 %v4902_v56, %v6789_v43 }
 0xd02   : > { %v4948_v20 = vadd.f32 %v4910_v6, %v6795_v23  ;;  %v4950_v47 = vadd.f32 %v4895_v30, %v6803_v1 }
 0xd03   : > { %v4913_v8 = vcombine.high %v4909_v58, %v4909_v58  ;;  %v4949_v46 = vadd.f32 %v4912_v17, %v6800_v28  ;;  %v4951_v49 = vadd.f32 %v4909_v58, %v6806_v14  ;;  %v4952_v60 = vadd.f32 %v4911_v21, %v6812_v54 }
 0xd04   : > { %v4966_v42 = vcombine.low %v4946_v55, %v4947_v18  ;;  %v4988_v28 = vrot.slane %v4950_v47, %v6196_v11  ;;  %v5027_v14 = vrot.slane %v4955_v41, %v6196_v11 }
 0xd05   : > { %v4953_v59 = vadd.f32 %v4913_v8, %v6815_v35  ;;  %v4967_v4 = vcombine.low %v4948_v20, %v4949_v46  ;;  %v5005_v43 = vcombine.low %v4951_v49, %v4952_v60 }
 0xd06   : > { %v4974_v23 = vrot.slane %v4966_v42, %v6196_v11  ;;  %v5003_v35 = vrot.slane %v4988_v28, %v6196_v11  ;;  %v5042_v22 = vrot.slane %v5027_v14, %v6196_v11 }
 0xd07   : > { %v4981_v33 = vrot.slane %v4967_v4, %v6196_v11  ;;  %v5006_v1 = vcombine.low %v4953_v59, %v4954_v48  ;;  %v5013_v54 = vrot.slane %v5005_v43, %v6196_v11 }
 0xd09   : > { %v4989_v50 = vcombine.low %v4974_v23, %v4981_v33  ;;  %v5020_v63 = vrot.slane %v5006_v1, %v6196_v11 }
 0xd0b   : > { %v4996_v62 = vrot.slane %v4989_v50, %v6196_v11  ;;  %v5028_v5 = vcombine.low %v5013_v54, %v5020_v63 }
 0xd0d   : > { %v5004_v57 = vcombine.low %v4996_v62, %v5003_v35  ;;  %v5035_v0 = vrot.slane %v5028_v5, %v6196_v11  ;;  %5052 = sbr.rel (%p5510_p5) target bundleno = 3871 (0xf1f), region = 112 }
 0xd0f   : > { %v5043_v24 = vcombine.low %v5035_v0, %v5042_v22  ;;  %5047 = vst.msk [vmem:[#allocation2] sm:$0x1f] %vm5046_vm12, %v5004_v57 }
 0xd11   : > { %5048 = vst.msk [vmem:[#allocation2 + $0x8] sm:$0x1f] %vm5046_vm12, %v5043_v24 }
 0xd12   : > { %v5055_v51 = vcombine.low %v4946_v55, %v4951_v49  ;;  %v5192_v38 = vld [vmem:[%s7129_s5 + $0x18] sm:$0xff]  ;;  %v5891_v29 = vmov 0.0   ;;  %v5191_v32 = vld [vmem:[%s7129_s5 + $0x10] sm:$0xff]  ;;  %vm5892_vm13 = vmmov 0   ;;  %v5190_v3 = vld [vmem:[%s7129_s5 + $0x8] sm:$0xff]  ;;  %vm5282_vm14 = vcmask 123904  }
 0xd13   : > { %5743 = vmatprep.subr.mxu0 %v5891_v29  ;;  %5751 = vmatprep.mubr.msk.f32.mxu0 %vm5892_vm13, %v5891_v29  ;;  %v5189_v15 = vld [vmem:[%s7129_s5] sm:$0xff] }
 0xd14   : > { %v5062_v34 = vrot.slane %v5055_v51, %v6196_v11  ;;  %5744 = vmatpush3.msra.mxu0 %v5192_v38  ;;  %v5511_v30 = vld [vmem:[%s7130_s22] ss:$0 sm:$0xff] }
 0xd15   : > { %5745 = vmatprep.subr.mxu0 %v5891_v29  ;;  %v5512_v56 = vld [vmem:[%s7131_s8] ss:$0 sm:$0xff]  ;;  %v5138_v37 = vrot.slane %v5511_v30, %v6196_v11 }
 0xd16   : > { %v5069_v27 = vrot.slane %v5062_v34, %v6196_v11  ;;  %5746 = vmatpush3.msra.mxu0 %v5191_v32  ;;  %v5169_v6 = vrot.slane %v5512_v56, %v6196_v11 }
 0xd17   : > { %5747 = vmatprep.subr.mxu0 %v5891_v29  ;;  %v5139_v31 = vcombine.high %v5138_v37, %v5138_v37  ;;  %v5146_v18 = vrot.slane %v5138_v37, %v6196_v11 }
 0xd18   : > { %v5071_v40 = vsel %vm1144_vm4, %v5069_v27, 0.0  ;;  %5748 = vmatpush3.msra.mxu0 %v5190_v3  ;;  %v5170_v58 = vcombine.high %v5169_v6, %v5169_v6  ;;  %v5177_v47 = vrot.slane %v5169_v6, %v6196_v11 }
 0xd19   : > { %5072 = vadd.xlane.f32.xlu0 %v5071_v40  ;;  %5749 = vmatprep.subr.mxu0 %v5891_v29  ;;  %v5153_v20 = vrot.slane %v5139_v31, %v6196_v11 }
 0xd1a   : > { %5750 = vmatpush3.msra.mxu0 %v5189_v15 }
 0xda2   : > { %v5073_v61 = vpop.xlane.xlu0 %5072 }
 0xda3   : > { %v5074_v12 = vmul.f32 0.03125, %v5073_v61 }
 0xda5   : > { %v5079_v2 = vrot.slane %v5074_v12, %v6249_v44  ;;  %v5083_v53 = vrot.slane %v5074_v12, %v6252_v45 }
 0xda7   : > { %v5086_v25 = vsub.f32 %v4946_v55, %v5079_v2  ;;  %v5087_v19 = vsub.f32 %v4951_v49, %v5083_v53  ;;  %v5184_v49 = vrot.slane %v5170_v58, %v6196_v11 }
 0xda9   : > { %v5088_v26 = vmul.f32 %v5086_v25, %v5086_v25  ;;  %v5089_v13 = vmul.f32 %v5087_v19, %v5087_v19 }
 0xdab   : > { %v5092_v39 = vcombine.low %v5088_v26, %v5089_v13 }
 0xdad   : > { %v5099_v10 = vrot.slane %v5092_v39, %v6196_v11 }
 0xdaf   : > { %v5106_v52 = vrot.slane %v5099_v10, %v6196_v11 }
 0xdb1   : > { %v5108_v7 = vsel %vm1144_vm4, %v5106_v52, 0.0 }
 0xdb2   : > { %5109 = vadd.xlane.f32.xlu0 %v5108_v7 }
 0xe3b   : > { %v5110_v16 = vpop.xlane.xlu0 %5109 }
 0xe3c   : > { %v5111_v9 = vmul.f32 0.03125, %v5110_v16 }
 0xe3e   : > { %v5112_v36 = vadd.f32 1e-05, %v5111_v9 }
 0xe40   : > { %5839 = vrsqrt.f32 %v5112_v36 }
 0xe4d   : > { %v5840_v21 = vpop.eup %5839 }
 0xe4e   : > { %v5118_v17 = vrot.slane %v5840_v21, %v6249_v44  ;;  %v5122_v55 = vrot.slane %v5840_v21, %v6252_v45 }
 0xe50   : > { %v5125_v8 = vmul.f32 %v5118_v17, %v5086_v25  ;;  %v5126_v46 = vmul.f32 %v5122_v55, %v5087_v19 }
 0xe52   : > { %v5156_v60 = vmul.f32 %v5146_v18, %v5125_v8  ;;  %v5157_v42 = vmul.f32 %v5153_v20, %v5126_v46 }
 0xe54   : > { %v5187_v48 = vadd.f32 %v5177_v47, %v5156_v60  ;;  %v5188_v41 = vadd.f32 %v5184_v49, %v5157_v42 }
 0xe56   : > { %v5195_v59 = vcombine.low %v5187_v48, %v5188_v41 }
 0xe58   : > { %v5202_v4 = vrot.slane %v5195_v59, %v6196_v11 }
 0xe5a   : > { %v5209_v44 = vrot.slane %v5202_v4, %v6196_v11 }
 0xe5c   : > { %5752 = vmatmul.mubr.msk.f32.vlgmr.msra.gmra.mxu0 %vm1140_vm3, %v5209_v44 }
 0xf1c   : > { %v5278_v45 = vpop.f32.mrf.mxu0 }
 0xf1d   : > { %5283 = vst.msk [vmem:[#allocation3] sm:$0x3] %vm5282_vm14, %v5278_v45 }
 0xf1e   : > { %v5753_v43 = vpop.f32.mrf.mxu0 }
 0xf1f PF: > { %p5758_p6 = scmp.eq.s32.totalorder %s6010_s25, 1  ;;  %s5893_s18 = smov [#allocation3]  }
 0xf20   : > { %s5291_s10 = sshll.u32 %s5893_s18, 4  ;;  %s5292_s10 = int_to_ptr.vmem [resolvable:$true] %s5291_s10 }
 0xf21   : > { %s5841_s23 = scalar_lea.vmem %s5292_s10, 32  ;;  %p5848_p10 = scmp.lt.s32.totalorder %s5292_s10, %s5292_s10 }
 0xf22   : > { %p5842_p7 = scmp.ne.s32.totalorder %s5292_s10, %s5841_s23  ;;  %p5849_p11 = scmp.lt.s32.totalorder %s5841_s23, %s5841_s23 }
 0xf24   : > { %p5843_p8 = pnand %p5842_p7, %p5758_p6  ;;  %p5850_p12 = por %p5849_p11, %p5848_p10 }
 0xf26   : > { %p5844_p9 = pneg %p5843_p8 }
 0xf28   : > { %p5851_p13 = pnand %p5850_p12, %p5844_p9 }
 0xf2a   : > { %5854 = shalt.err (!%p5851_p13)
}
 0xf2b   : > { %s7132_s20 = sld [smem:[#allocation21_spill]] }
 0xf31   : > { %5755 = dma.vmem_to_hbm [thread:$0]  (%p5758_p6), %s5292_s10, 32, %s7132_s20, [#allocation4]  }
 0xf32   : > { %5870 = dma.done.wait (%p5758_p6), [#allocation4], 32  }
 0xf33   : > { %5872 = vsyncadd (%p5758_p6), [#allocation4], 4294967264 }
 0xf34 PF: > { %s7133_s3 = sld [smem:[#allocation6_spill]] }
 0xf3a   : > { %s32_s2 = sadd.s32 1, %s7133_s3  }
 0xf3b   : > { %p29_p0 = scmp.ge.s32.totalorder %s32_s2, 4  }
 0xf3d   :  { %31 = sbr.rel (!%p29_p0) target bundleno = 14 (0xe), region = 172 }
 0xf42   :  { %5304 = vsyncpa [#allocation4], 1 }
 0xf43   :  { %5306 = vsyncpa [#allocation4 + $0x1], 1 }

</bundles_post_ra>
